<compile_context>
chip_gen: v7x
topology: tpu7x:2x2x1
jax: 0.10.0
libtpu: 0.0.40
codegen_flags: <defaults>
</compile_context>

<pallas_src>
import functools

import jax
import jax.numpy as jnp
import numpy as np
from jax.experimental import pallas as pl
from jax.experimental.pallas import tpu as pltpu


def _round_up(x, m):
    return (x + m - 1) // m * m


def _vec_layout(Cin, Cb, Cout):
    """Row layout of the packed f32 column-vector bank (each segment 8-row aligned)."""
    sizes = [('s1', Cin), ('t1', Cin), ('b1c', Cb + Cout), ('b2', Cb),
             ('bse2', Cb), ('s3', Cb), ('t3', Cb), ('b3', Cout)]
    off, cur = {}, 0
    for name, sz in sizes:
        off[name] = (cur, sz)
        cur = _round_up(cur + sz, 8)
    return off, _round_up(cur, 8)


def prebottleneck_kernel(
    x_ref,        # (Cin, N*HW)            f32   post-layout input
    vecs_ref,     # (Rv, 1)                f32   packed per-channel vectors
    mats_ref,     # (Rm, 9 + 2*Cse)        f32   w2 taps | wse1 (+bse1 row) | wse2
    masks_ref,    # (8, N*HW)              f32   row/col border masks + image indicators
    wts_ref,      # (Rw, max(Cin, Cb))     bf16  [conv1*BN2 ; downsample] and conv3 weights
    o_ref,        # (Cout, N*HW)           f32
    *, N, H, W, Cin, Cb, Cout, Cse, vec_off, mats_bse1_row, wts_w3_row,
):
    HW = H * W
    NHW = N * HW

    # ---- unpack parameter banks (one load per bank, register slices afterwards) --------
    vecs = vecs_ref[...]

    def vec(name):
        s, n = vec_off[name]
        return vecs[s:s + n]                       # (n, 1)

    s1, t1 = vec('s1'), vec('t1')
    b1c = vec('b1c')                               # (Cb+Cout, 1)  [conv1(BN2-folded) ; ds]
    b2 = vec('b2')
    bse2, s3, t3, b3 = vec('bse2'), vec('s3'), vec('t3'), vec('b3')

    mats = mats_ref[...]
    w2 = mats[0:Cb, 0:9]                           # depthwise taps, index kh*3+kw
    wse1 = mats[0:Cb, 9:9 + Cse]                   # (Cb, Cse)  (stored transposed)
    wse2 = mats[0:Cb, 9 + Cse:9 + 2 * Cse]         # (Cb, Cse)
    bse1 = mats[mats_bse1_row:mats_bse1_row + 1, 9:9 + Cse]   # (1, Cse)

    wts = wts_ref[...]
    w1c = wts[0:Cb + Cout, 0:Cin]                  # bf16 (Cb+Cout, Cin)
    w3 = wts[wts_w3_row:wts_w3_row + Cout, 0:Cb]   # bf16 (Cout, Cb)

    mk = masks_ref[...]
    m_top = mk[0:1, :]        # 1 except destination rows h == 0        (for dh == -1)
    m_bot = mk[1:2, :]        # 1 except destination rows h == H-1      (for dh == +1)
    m_src_r = mk[2:3, :]      # 1 except source cols   w == W-1         (for dw == -1)
    m_src_l = mk[3:4, :]      # 1 except source cols   w == 0           (for dw == +1)

    # ---- norm1 (inference BN) + ReLU ---------------------------------------- (VPU, f32)
    x = jnp.maximum(x_ref[...] * s1 + t1, 0.0)                       # (Cin, NHW)
    x_bf = x.astype(jnp.bfloat16)

    # ---- conv1 (1x1, BN2 pre-folded) fused with downsample 1x1 --------------- (MXU)
    fused = jnp.dot(w1c, x_bf, preferred_element_type=jnp.float32) + b1c   # (Cb+Cout, NHW)
    y = jnp.maximum(fused[0:Cb, :], 0.0)           # conv1 -> BN2 -> ReLU       (Cb, NHW)
    shortcut = fused[Cb:Cb + Cout, :]              # kept in registers          (Cout, NHW)

    # ---- conv2: depthwise 3x3, stride 1, pad 1 ------------------- (XLU rolls + VPU muls)
    # Source-column masking handles dw=+-1 borders (and cross-image wrap); destination-row
    # masking handles dh=+-1 borders (and cross-image wrap).
    y_m = y * m_src_r                              # source copy for dw == -1 taps
    y_p = y * m_src_l                              # source copy for dw == +1 taps

    def shifted(src, s):                           # shifted[i] = src[i + s]
        if s == 0:
            return src
        return pltpu.roll(src, shift=(-s) % NHW, axis=1)

    acc = None
    for kh in range(3):
        dh = kh - 1
        row = (shifted(y_m, dh * W - 1) * w2[:, kh * 3 + 0:kh * 3 + 1]
               + shifted(y, dh * W) * w2[:, kh * 3 + 1:kh * 3 + 2]
               + shifted(y_p, dh * W + 1) * w2[:, kh * 3 + 2:kh * 3 + 3])
        if dh == -1:
            row = row * m_top
        elif dh == 1:
            row = row * m_bot
        acc = row if acc is None else acc + row
    y = acc + b2                                   # (Cb, NHW)

    # ---- SE block (per-image) with BN3 scale folded into the gate -------------
    # Per-image avg-pool over static, lane-aligned slices; gate expanded back to the full
    # folded lane axis with host-side image-indicator masks (keeps conv3 at 512 lanes).
    gate = None
    inv_hw = 1.0 / HW
    for n in range(N):
        sl = y[:, n * HW:(n + 1) * HW]
        pooled = jnp.sum(sl, axis=1, keepdims=True) * inv_hw                       # (Cb, 1)
        z = jnp.maximum(jnp.sum(pooled * wse1, axis=0, keepdims=True) + bse1, 0.0)  # (1, Cse)
        g = jax.nn.sigmoid(jnp.sum(wse2 * z, axis=1, keepdims=True) + bse2)         # (Cb, 1)
        part = (g * s3) * mk[4 + n:5 + n, :]                                        # (Cb, NHW)
        gate = part if gate is None else gate + part
    y = jnp.maximum(y * gate + t3, 0.0)            # SE gate * BN3 + ReLU         (Cb, NHW)

    # ---- conv3 (1x1) + preact shortcut, single wide store ---------------------- (MXU)
    out = jnp.dot(w3, y.astype(jnp.bfloat16), preferred_element_type=jnp.float32) + b3
    o_ref[...] = shortcut + out                    # (Cout, NHW)


def prebottleneck(x_nchw, kp):
    """x_nchw: (N, Cin, H, W) f32 -> (N, Cout, H, W) f32.  kp = prepare_params(raw, N, H, W)."""
    N, Cin, H, W = x_nchw.shape
    meta = kp['meta']
    Cb, Cout, Cse = meta['Cb'], meta['Cout'], meta['Cse']
    HW, NHW = H * W, N * H * W
    assert HW % 128 == 0, "per-image lane slices stay tile-aligned (TODO: pad for HW=3136)"

    # Layout plumbing only: fold the batch into the lane axis.
    x_l = jnp.transpose(x_nchw, (1, 0, 2, 3)).reshape(Cin, NHW)

    kern = functools.partial(
        prebottleneck_kernel,
        N=N, H=H, W=W, Cin=Cin, Cb=Cb, Cout=Cout, Cse=Cse,
        vec_off=meta['vec_off'], mats_bse1_row=meta['mats_bse1_row'],
        wts_w3_row=meta['wts_w3_row'])

    # Single invocation (no grid): all 5 inputs and the output live whole in VMEM
    # (total well under 1 MiB at these shapes), 5 DMAs in, 1 out.
    out = pl.pallas_call(
        kern,
        out_shape=jax.ShapeDtypeStruct((Cout, NHW), jnp.float32),
    )(x_l, kp['vecs'], kp['mats'], kp['masks'], kp['wts'])

    return jnp.transpose(out.reshape(Cout, N, H, W), (1, 0, 2, 3))


def init_params(key, Cin, Cout, Cb, Cse, eps=1e-5):
    """Raw module parameters (math layout: conv weights (out, in), BN folded to scale/shift)."""
    ks = iter(jax.random.split(key, 32))

    def bn(C):
        gamma = 1.0 + 0.1 * jax.random.normal(next(ks), (C,), jnp.float32)
        beta = 0.1 * jax.random.normal(next(ks), (C,), jnp.float32)
        mean = 0.1 * jax.random.normal(next(ks), (C,), jnp.float32)
        var = jax.random.uniform(next(ks), (C,), jnp.float32, minval=0.5, maxval=1.5)
        scale = gamma / jnp.sqrt(var + eps)
        shift = beta - mean * scale
        return scale, shift

    def w(shape, fan_in):
        return jax.random.normal(next(ks), shape, jnp.float32) / np.sqrt(fan_in)

    p = {}
    p['s1'], p['t1'] = bn(Cin)
    p['w1'] = w((Cb, Cin), Cin)          # conv1 1x1: (Cb,Cin,1,1) -> (Cb,Cin)
    p['b1'] = w((Cb,), Cin)
    p['s2'], p['t2'] = bn(Cb)
    p['w2'] = w((Cb, 3, 3), 9)           # depthwise: (Cb,1,3,3) -> (Cb,3,3)
    p['b2'] = w((Cb,), 9)
    p['wse1'] = w((Cse, Cb), Cb)         # SE fc1: (Cse,Cb,1,1) -> (Cse,Cb)
    p['bse1'] = w((Cse,), Cb)
    p['wse2'] = w((Cb, Cse), Cse)        # SE fc2: (Cb,Cse,1,1) -> (Cb,Cse)
    p['bse2'] = w((Cb,), Cse)
    p['s3'], p['t3'] = bn(Cb)
    p['w3'] = w((Cout, Cb), Cb)          # conv3 1x1: (Cout,Cb,1,1) -> (Cout,Cb)
    p['b3'] = w((Cout,), Cb)
    p['wds'] = w((Cout, Cin), Cin)       # downsample 1x1 (preact -> plain conv)
    p['bds'] = w((Cout,), Cin)
    return p


def prepare_params(p, N, H, W):
    """Pack raw params into 4 kernel banks (BN2 folded into conv1, conv1 fused with ds)."""
    Cin = p['s1'].shape[0]
    Cb = p['w1'].shape[0]
    Cout = p['w3'].shape[0]
    Cse = p['wse1'].shape[0]
    HW, NHW = H * W, N * H * W

    # BN2 fold (exact in f32): relu(s2*(W1 x + b1) + t2) == relu((s2*W1) x + (s2*b1 + t2)).
    w1f = np.asarray(p['w1']) * np.asarray(p['s2'])[:, None]
    b1f = np.asarray(p['b1']) * np.asarray(p['s2']) + np.asarray(p['t2'])

    # f32 column-vector bank.
    vec_off, rows = _vec_layout(Cin, Cb, Cout)
    vecs = np.zeros((rows, 1), np.float32)

    def put(name, val):
        s, n = vec_off[name]
        vecs[s:s + n, 0] = np.asarray(val)

    put('s1', p['s1']); put('t1', p['t1'])
    put('b1c', np.concatenate([b1f, np.asarray(p['bds'])]))
    put('b2', p['b2']); put('bse2', p['bse2'])
    put('s3', p['s3']); put('t3', p['t3']); put('b3', p['b3'])

    # f32 small-matrix bank: depthwise taps | SE fc1 (with bias row) | SE fc2.
    bse1_row = _round_up(Cb, 8)
    mats = np.zeros((bse1_row + 8, 9 + 2 * Cse), np.float32)
    mats[0:Cb, 0:9] = np.asarray(p['w2']).reshape(Cb, 9)
    mats[0:Cb, 9:9 + Cse] = np.asarray(p['wse1']).T
    mats[0:Cb, 9 + Cse:9 + 2 * Cse] = np.asarray(p['wse2'])
    mats[bse1_row, 9:9 + Cse] = np.asarray(p['bse1'])

    # f32 mask bank: depthwise border masks + per-image lane indicators (host-precomputed).
    lane = np.arange(NHW)
    pos = lane % HW
    hh, ww = pos // W, pos % W
    masks = np.zeros((8, NHW), np.float32)
    masks[0] = (hh >= 1)            # destinations valid for dh == -1
    masks[1] = (hh <= H - 2)        # destinations valid for dh == +1
    masks[2] = (ww <= W - 2)        # zero source col W-1   (dw == -1 taps)
    masks[3] = (ww >= 1)            # zero source col 0     (dw == +1 taps)
    for n in range(N):
        masks[4 + n] = (lane // HW == n)

    # bf16 weight bank: [conv1*BN2 ; downsample] stacked over conv3.
    Kw = max(Cin, Cb)
    w3_row = _round_up(Cb + Cout, 16)
    wts = np.zeros((w3_row + _round_up(Cout, 16), Kw), np.float32)
    wts[0:Cb, 0:Cin] = w1f
    wts[Cb:Cb + Cout, 0:Cin] = np.asarray(p['wds'])
    wts[w3_row:w3_row + Cout, 0:Cb] = np.asarray(p['w3'])

    return dict(
        vecs=jnp.asarray(vecs),
        mats=jnp.asarray(mats),
        masks=jnp.asarray(masks),
        wts=jnp.asarray(wts).astype(jnp.bfloat16),
        meta=dict(Cin=Cin, Cb=Cb, Cout=Cout, Cse=Cse, vec_off=vec_off,
                  mats_bse1_row=bse1_row, wts_w3_row=w3_row),
    )


def reference(x_nchw, p):
    """Pure-JAX NCHW reference: same math, same bf16 quantization of matmul operands."""
    x = x_nchw
    N, Cin, H, W = x.shape
    x = jax.nn.relu(x * p['s1'][None, :, None, None] + p['t1'][None, :, None, None])
    shortcut = x
    xb = x.astype(jnp.bfloat16)
    w1f = (p['w1'] * p['s2'][:, None]).astype(jnp.bfloat16)
    b1f = p['b1'] * p['s2'] + p['t2']
    y = jnp.einsum('oc,nchw->nohw', w1f, xb,
                   preferred_element_type=jnp.float32) + b1f[None, :, None, None]
    y = jax.nn.relu(y)
    yp = jnp.pad(y, ((0, 0), (0, 0), (1, 1), (1, 1)))
    acc = jnp.zeros_like(y)
    for kh in range(3):
        for kw in range(3):
            acc = acc + yp[:, :, kh:kh + H, kw:kw + W] * p['w2'][:, kh, kw][None, :, None, None]
    y = acc + p['b2'][None, :, None, None]
    pooled = jnp.mean(y, axis=(2, 3))
    z = jax.nn.relu(pooled @ p['wse1'].T + p['bse1'])
    g = jax.nn.sigmoid(z @ p['wse2'].T + p['bse2'])
    y = y * g[:, :, None, None]
    y = jax.nn.relu(y * p['s3'][None, :, None, None] + p['t3'][None, :, None, None])
    out = jnp.einsum('oc,nchw->nohw', p['w3'].astype(jnp.bfloat16), y.astype(jnp.bfloat16),
                     preferred_element_type=jnp.float32) + p['b3'][None, :, None, None]
    ds = jnp.einsum('oc,nchw->nohw', p['wds'].astype(jnp.bfloat16), shortcut.astype(jnp.bfloat16),
                    preferred_element_type=jnp.float32) + p['bds'][None, :, None, None]
    return out + ds


if __name__ == "__main__":
    # Module config: in_chs=8, out_chs=16, bottle_ratio=1 -> Cb=16, group_size=1 -> depthwise,
    # se_ratio=0.25 -> Cse=round(8*0.25)=2, stride=1, downsample='conv1x1' (in_chs != out_chs).
    N, Cin, Cout, H, W = 2, 8, 16, 16, 16
    Cb, Cse = 16, 2

    key = jax.random.PRNGKey(0)
    kx, kparam = jax.random.split(key)
    x = jax.random.normal(kx, (N, Cin, H, W), jnp.float32)

    raw_params = init_params(kparam, Cin, Cout, Cb, Cse)
    kernel_params = prepare_params(raw_params, N, H, W)

    out = jax.block_until_ready(prebottleneck(x, kernel_params))
    ref = jax.block_until_ready(reference(x, raw_params))
    np.testing.assert_allclose(np.asarray(out), np.asarray(ref), rtol=1e-2, atol=1e-2)

    print("KERNEL_OK")
</pallas_src>

<mosaic_0001>
module attributes {stable_mosaic.version = 11 : i64} {
  func.func @prebottleneck_kernel(%arg0: memref<8x512xf32, #tpu.memory_space<vmem>>, %arg1: memref<128x1xf32, #tpu.memory_space<vmem>>, %arg2: memref<24x13xf32, #tpu.memory_space<vmem>>, %arg3: memref<8x512xf32, #tpu.memory_space<vmem>>, %arg4: memref<48x16xbf16, #tpu.memory_space<vmem>>, %arg5: memref<16x512xf32, #tpu.memory_space<vmem>>) attributes {dimension_semantics = [], scalar_prefetch = 0 : i64, scratch_operands = 0 : i64, tpu.core_type = #tpu.core_type<tc>} {
    %c0 = arith.constant 0 : index
    %c0_0 = arith.constant 0 : index
    %0 = vector.load %arg1[%c0, %c0_0] : memref<128x1xf32, #tpu.memory_space<vmem>>, vector<128x1xf32>
    %1 = vector.extract_strided_slice %0 {offsets = [0, 0], sizes = [8, 1], strides = [1, 1]} : vector<128x1xf32> to vector<8x1xf32>
    %2 = vector.extract_strided_slice %0 {offsets = [8, 0], sizes = [8, 1], strides = [1, 1]} : vector<128x1xf32> to vector<8x1xf32>
    %3 = vector.extract_strided_slice %0 {offsets = [16, 0], sizes = [32, 1], strides = [1, 1]} : vector<128x1xf32> to vector<32x1xf32>
    %4 = vector.extract_strided_slice %0 {offsets = [48, 0], sizes = [16, 1], strides = [1, 1]} : vector<128x1xf32> to vector<16x1xf32>
    %5 = vector.extract_strided_slice %0 {offsets = [64, 0], sizes = [16, 1], strides = [1, 1]} : vector<128x1xf32> to vector<16x1xf32>
    %6 = vector.extract_strided_slice %0 {offsets = [80, 0], sizes = [16, 1], strides = [1, 1]} : vector<128x1xf32> to vector<16x1xf32>
    %7 = vector.extract_strided_slice %0 {offsets = [96, 0], sizes = [16, 1], strides = [1, 1]} : vector<128x1xf32> to vector<16x1xf32>
    %8 = vector.extract_strided_slice %0 {offsets = [112, 0], sizes = [16, 1], strides = [1, 1]} : vector<128x1xf32> to vector<16x1xf32>
    %c0_1 = arith.constant 0 : index
    %c0_2 = arith.constant 0 : index
    %9 = vector.load %arg2[%c0_1, %c0_2] : memref<24x13xf32, #tpu.memory_space<vmem>>, vector<24x13xf32>
    %10 = vector.extract_strided_slice %9 {offsets = [0, 0], sizes = [16, 9], strides = [1, 1]} : vector<24x13xf32> to vector<16x9xf32>
    %11 = vector.extract_strided_slice %9 {offsets = [0, 9], sizes = [16, 2], strides = [1, 1]} : vector<24x13xf32> to vector<16x2xf32>
    %12 = vector.extract_strided_slice %9 {offsets = [0, 11], sizes = [16, 2], strides = [1, 1]} : vector<24x13xf32> to vector<16x2xf32>
    %13 = vector.extract_strided_slice %9 {offsets = [16, 9], sizes = [1, 2], strides = [1, 1]} : vector<24x13xf32> to vector<1x2xf32>
    %c0_3 = arith.constant 0 : index
    %c0_4 = arith.constant 0 : index
    %14 = vector.load %arg4[%c0_3, %c0_4] : memref<48x16xbf16, #tpu.memory_space<vmem>>, vector<48x16xbf16>
    %15 = vector.extract_strided_slice %14 {offsets = [0, 0], sizes = [32, 8], strides = [1, 1]} : vector<48x16xbf16> to vector<32x8xbf16>
    %16 = vector.extract_strided_slice %14 {offsets = [32, 0], sizes = [16, 16], strides = [1, 1]} : vector<48x16xbf16> to vector<16x16xbf16>
    %c0_5 = arith.constant 0 : index
    %c0_6 = arith.constant 0 : index
    %17 = vector.load %arg3[%c0_5, %c0_6] : memref<8x512xf32, #tpu.memory_space<vmem>>, vector<8x512xf32>
    %18 = vector.extract_strided_slice %17 {offsets = [0, 0], sizes = [1, 512], strides = [1, 1]} : vector<8x512xf32> to vector<1x512xf32>
    %19 = vector.extract_strided_slice %17 {offsets = [1, 0], sizes = [1, 512], strides = [1, 1]} : vector<8x512xf32> to vector<1x512xf32>
    %20 = vector.extract_strided_slice %17 {offsets = [2, 0], sizes = [1, 512], strides = [1, 1]} : vector<8x512xf32> to vector<1x512xf32>
    %21 = vector.extract_strided_slice %17 {offsets = [3, 0], sizes = [1, 512], strides = [1, 1]} : vector<8x512xf32> to vector<1x512xf32>
    %c0_7 = arith.constant 0 : index
    %c0_8 = arith.constant 0 : index
    %22 = vector.load %arg0[%c0_7, %c0_8] : memref<8x512xf32, #tpu.memory_space<vmem>>, vector<8x512xf32>
    %23 = vector.broadcast %1 : vector<8x1xf32> to vector<8x512xf32>
    %24 = arith.mulf %22, %23 : vector<8x512xf32>
    %25 = vector.broadcast %2 : vector<8x1xf32> to vector<8x512xf32>
    %26 = arith.addf %24, %25 : vector<8x512xf32>
    %cst = arith.constant 0.000000e+00 : f32
    %27 = vector.broadcast %cst : f32 to vector<8x512xf32>
    %28 = arith.maximumf %26, %27 : vector<8x512xf32>
    %29 = arith.truncf %28 : vector<8x512xf32> to vector<8x512xbf16>
    %cst_9 = arith.constant dense<0.000000e+00> : vector<32x512xf32>
    %30 = tpu.matmul %15, %29, %cst_9 {dimension_numbers = #tpu.dot_dimension_numbers<[1], [0], [0], [1], [0, 0, 1, 1], [], []>} : vector<32x8xbf16>, vector<8x512xbf16>, vector<32x512xf32> -> vector<32x512xf32>
    %31 = vector.broadcast %3 : vector<32x1xf32> to vector<32x512xf32>
    %32 = arith.addf %30, %31 : vector<32x512xf32>
    %33 = vector.extract_strided_slice %32 {offsets = [0, 0], sizes = [16, 512], strides = [1, 1]} : vector<32x512xf32> to vector<16x512xf32>
    %cst_10 = arith.constant 0.000000e+00 : f32
    %34 = vector.broadcast %cst_10 : f32 to vector<16x512xf32>
    %35 = arith.maximumf %33, %34 : vector<16x512xf32>
    %36 = vector.extract_strided_slice %32 {offsets = [16, 0], sizes = [16, 512], strides = [1, 1]} : vector<32x512xf32> to vector<16x512xf32>
    %37 = vector.broadcast %20 : vector<1x512xf32> to vector<16x512xf32>
    %38 = arith.mulf %35, %37 : vector<16x512xf32>
    %39 = vector.broadcast %21 : vector<1x512xf32> to vector<16x512xf32>
    %40 = arith.mulf %35, %39 : vector<16x512xf32>
    %c17_i32 = arith.constant 17 : i32
    %41 = tpu.dynamic_rotate %38 by %c17_i32 dim 1 : vector<16x512xf32>, i32 -> vector<16x512xf32>
    %42 = vector.extract_strided_slice %10 {offsets = [0, 0], sizes = [16, 1], strides = [1, 1]} : vector<16x9xf32> to vector<16x1xf32>
    %43 = vector.broadcast %42 : vector<16x1xf32> to vector<16x512xf32>
    %44 = arith.mulf %41, %43 : vector<16x512xf32>
    %c16_i32 = arith.constant 16 : i32
    %45 = tpu.dynamic_rotate %35 by %c16_i32 dim 1 : vector<16x512xf32>, i32 -> vector<16x512xf32>
    %46 = vector.extract_strided_slice %10 {offsets = [0, 1], sizes = [16, 1], strides = [1, 1]} : vector<16x9xf32> to vector<16x1xf32>
    %47 = vector.broadcast %46 : vector<16x1xf32> to vector<16x512xf32>
    %48 = arith.mulf %45, %47 : vector<16x512xf32>
    %49 = arith.addf %44, %48 : vector<16x512xf32>
    %c15_i32 = arith.constant 15 : i32
    %50 = tpu.dynamic_rotate %40 by %c15_i32 dim 1 : vector<16x512xf32>, i32 -> vector<16x512xf32>
    %51 = vector.extract_strided_slice %10 {offsets = [0, 2], sizes = [16, 1], strides = [1, 1]} : vector<16x9xf32> to vector<16x1xf32>
    %52 = vector.broadcast %51 : vector<16x1xf32> to vector<16x512xf32>
    %53 = arith.mulf %50, %52 : vector<16x512xf32>
    %54 = arith.addf %49, %53 : vector<16x512xf32>
    %55 = vector.broadcast %18 : vector<1x512xf32> to vector<16x512xf32>
    %56 = arith.mulf %54, %55 : vector<16x512xf32>
    %c1_i32 = arith.constant 1 : i32
    %57 = tpu.dynamic_rotate %38 by %c1_i32 dim 1 : vector<16x512xf32>, i32 -> vector<16x512xf32>
    %58 = vector.extract_strided_slice %10 {offsets = [0, 3], sizes = [16, 1], strides = [1, 1]} : vector<16x9xf32> to vector<16x1xf32>
    %59 = vector.broadcast %58 : vector<16x1xf32> to vector<16x512xf32>
    %60 = arith.mulf %57, %59 : vector<16x512xf32>
    %61 = vector.extract_strided_slice %10 {offsets = [0, 4], sizes = [16, 1], strides = [1, 1]} : vector<16x9xf32> to vector<16x1xf32>
    %62 = vector.broadcast %61 : vector<16x1xf32> to vector<16x512xf32>
    %63 = arith.mulf %35, %62 : vector<16x512xf32>
    %64 = arith.addf %60, %63 : vector<16x512xf32>
    %c511_i32 = arith.constant 511 : i32
    %65 = tpu.dynamic_rotate %40 by %c511_i32 dim 1 : vector<16x512xf32>, i32 -> vector<16x512xf32>
    %66 = vector.extract_strided_slice %10 {offsets = [0, 5], sizes = [16, 1], strides = [1, 1]} : vector<16x9xf32> to vector<16x1xf32>
    %67 = vector.broadcast %66 : vector<16x1xf32> to vector<16x512xf32>
    %68 = arith.mulf %65, %67 : vector<16x512xf32>
    %69 = arith.addf %64, %68 : vector<16x512xf32>
    %70 = arith.addf %56, %69 : vector<16x512xf32>
    %c497_i32 = arith.constant 497 : i32
    %71 = tpu.dynamic_rotate %38 by %c497_i32 dim 1 : vector<16x512xf32>, i32 -> vector<16x512xf32>
    %72 = vector.extract_strided_slice %10 {offsets = [0, 6], sizes = [16, 1], strides = [1, 1]} : vector<16x9xf32> to vector<16x1xf32>
    %73 = vector.broadcast %72 : vector<16x1xf32> to vector<16x512xf32>
    %74 = arith.mulf %71, %73 : vector<16x512xf32>
    %c496_i32 = arith.constant 496 : i32
    %75 = tpu.dynamic_rotate %35 by %c496_i32 dim 1 : vector<16x512xf32>, i32 -> vector<16x512xf32>
    %76 = vector.extract_strided_slice %10 {offsets = [0, 7], sizes = [16, 1], strides = [1, 1]} : vector<16x9xf32> to vector<16x1xf32>
    %77 = vector.broadcast %76 : vector<16x1xf32> to vector<16x512xf32>
    %78 = arith.mulf %75, %77 : vector<16x512xf32>
    %79 = arith.addf %74, %78 : vector<16x512xf32>
    %c495_i32 = arith.constant 495 : i32
    %80 = tpu.dynamic_rotate %40 by %c495_i32 dim 1 : vector<16x512xf32>, i32 -> vector<16x512xf32>
    %81 = vector.extract_strided_slice %10 {offsets = [0, 8], sizes = [16, 1], strides = [1, 1]} : vector<16x9xf32> to vector<16x1xf32>
    %82 = vector.broadcast %81 : vector<16x1xf32> to vector<16x512xf32>
    %83 = arith.mulf %80, %82 : vector<16x512xf32>
    %84 = arith.addf %79, %83 : vector<16x512xf32>
    %85 = vector.broadcast %19 : vector<1x512xf32> to vector<16x512xf32>
    %86 = arith.mulf %84, %85 : vector<16x512xf32>
    %87 = arith.addf %70, %86 : vector<16x512xf32>
    %88 = vector.broadcast %4 : vector<16x1xf32> to vector<16x512xf32>
    %89 = arith.addf %87, %88 : vector<16x512xf32>
    %90 = vector.extract_strided_slice %89 {offsets = [0, 0], sizes = [16, 256], strides = [1, 1]} : vector<16x512xf32> to vector<16x256xf32>
    %cst_11 = arith.constant dense<0.000000e+00> : vector<16xf32>
    %91 = vector.multi_reduction <add>, %90, %cst_11 [1] : vector<16x256xf32> to vector<16xf32>
    %92 = vector.shape_cast %91 : vector<16xf32> to vector<16x1xf32>
    %cst_12 = arith.constant 3.906250e-03 : f32
    %93 = vector.broadcast %cst_12 : f32 to vector<16x1xf32>
    %94 = arith.mulf %92, %93 : vector<16x1xf32>
    %95 = vector.broadcast %94 : vector<16x1xf32> to vector<16x2xf32>
    %96 = arith.mulf %95, %11 : vector<16x2xf32>
    %cst_13 = arith.constant dense<0.000000e+00> : vector<2xf32>
    %97 = vector.multi_reduction <add>, %96, %cst_13 [0] : vector<16x2xf32> to vector<2xf32>
    %98 = vector.shape_cast %97 : vector<2xf32> to vector<1x2xf32>
    %99 = arith.addf %98, %13 : vector<1x2xf32>
    %cst_14 = arith.constant 0.000000e+00 : f32
    %100 = vector.broadcast %cst_14 : f32 to vector<1x2xf32>
    %101 = arith.maximumf %99, %100 : vector<1x2xf32>
    %102 = vector.broadcast %101 : vector<1x2xf32> to vector<16x2xf32>
    %103 = arith.mulf %12, %102 : vector<16x2xf32>
    %cst_15 = arith.constant dense<0.000000e+00> : vector<16xf32>
    %104 = vector.multi_reduction <add>, %103, %cst_15 [1] : vector<16x2xf32> to vector<16xf32>
    %105 = vector.shape_cast %104 : vector<16xf32> to vector<16x1xf32>
    %106 = arith.addf %105, %5 : vector<16x1xf32>
    %107 = arith.negf %106 : vector<16x1xf32>
    %108 = math.exp %107 : vector<16x1xf32>
    %cst_16 = arith.constant 1.000000e+00 : f32
    %109 = vector.broadcast %cst_16 : f32 to vector<16x1xf32>
    %110 = arith.addf %109, %108 : vector<16x1xf32>
    %111 = arith.divf %109, %110 : vector<16x1xf32>
    %112 = arith.mulf %111, %6 : vector<16x1xf32>
    %113 = vector.extract_strided_slice %17 {offsets = [4, 0], sizes = [1, 512], strides = [1, 1]} : vector<8x512xf32> to vector<1x512xf32>
    %114 = vector.broadcast %112 : vector<16x1xf32> to vector<16x512xf32>
    %115 = vector.broadcast %113 : vector<1x512xf32> to vector<16x512xf32>
    %116 = arith.mulf %114, %115 : vector<16x512xf32>
    %117 = vector.extract_strided_slice %89 {offsets = [0, 256], sizes = [16, 256], strides = [1, 1]} : vector<16x512xf32> to vector<16x256xf32>
    %cst_17 = arith.constant dense<0.000000e+00> : vector<16xf32>
    %118 = vector.multi_reduction <add>, %117, %cst_17 [1] : vector<16x256xf32> to vector<16xf32>
    %119 = vector.shape_cast %118 : vector<16xf32> to vector<16x1xf32>
    %cst_18 = arith.constant 3.906250e-03 : f32
    %120 = vector.broadcast %cst_18 : f32 to vector<16x1xf32>
    %121 = arith.mulf %119, %120 : vector<16x1xf32>
    %122 = vector.broadcast %121 : vector<16x1xf32> to vector<16x2xf32>
    %123 = arith.mulf %122, %11 : vector<16x2xf32>
    %cst_19 = arith.constant dense<0.000000e+00> : vector<2xf32>
    %124 = vector.multi_reduction <add>, %123, %cst_19 [0] : vector<16x2xf32> to vector<2xf32>
    %125 = vector.shape_cast %124 : vector<2xf32> to vector<1x2xf32>
    %126 = arith.addf %125, %13 : vector<1x2xf32>
    %cst_20 = arith.constant 0.000000e+00 : f32
    %127 = vector.broadcast %cst_20 : f32 to vector<1x2xf32>
    %128 = arith.maximumf %126, %127 : vector<1x2xf32>
    %129 = vector.broadcast %128 : vector<1x2xf32> to vector<16x2xf32>
    %130 = arith.mulf %12, %129 : vector<16x2xf32>
    %cst_21 = arith.constant dense<0.000000e+00> : vector<16xf32>
    %131 = vector.multi_reduction <add>, %130, %cst_21 [1] : vector<16x2xf32> to vector<16xf32>
    %132 = vector.shape_cast %131 : vector<16xf32> to vector<16x1xf32>
    %133 = arith.addf %132, %5 : vector<16x1xf32>
    %134 = arith.negf %133 : vector<16x1xf32>
    %135 = math.exp %134 : vector<16x1xf32>
    %cst_22 = arith.constant 1.000000e+00 : f32
    %136 = vector.broadcast %cst_22 : f32 to vector<16x1xf32>
    %137 = arith.addf %136, %135 : vector<16x1xf32>
    %138 = arith.divf %136, %137 : vector<16x1xf32>
    %139 = arith.mulf %138, %6 : vector<16x1xf32>
    %140 = vector.extract_strided_slice %17 {offsets = [5, 0], sizes = [1, 512], strides = [1, 1]} : vector<8x512xf32> to vector<1x512xf32>
    %141 = vector.broadcast %139 : vector<16x1xf32> to vector<16x512xf32>
    %142 = vector.broadcast %140 : vector<1x512xf32> to vector<16x512xf32>
    %143 = arith.mulf %141, %142 : vector<16x512xf32>
    %144 = arith.addf %116, %143 : vector<16x512xf32>
    %145 = arith.mulf %89, %144 : vector<16x512xf32>
    %146 = vector.broadcast %7 : vector<16x1xf32> to vector<16x512xf32>
    %147 = arith.addf %145, %146 : vector<16x512xf32>
    %cst_23 = arith.constant 0.000000e+00 : f32
    %148 = vector.broadcast %cst_23 : f32 to vector<16x512xf32>
    %149 = arith.maximumf %147, %148 : vector<16x512xf32>
    %150 = arith.truncf %149 : vector<16x512xf32> to vector<16x512xbf16>
    %cst_24 = arith.constant dense<0.000000e+00> : vector<16x512xf32>
    %151 = tpu.matmul %16, %150, %cst_24 {dimension_numbers = #tpu.dot_dimension_numbers<[1], [0], [0], [1], [0, 0, 1, 1], [], []>} : vector<16x16xbf16>, vector<16x512xbf16>, vector<16x512xf32> -> vector<16x512xf32>
    %152 = vector.broadcast %8 : vector<16x1xf32> to vector<16x512xf32>
    %153 = arith.addf %151, %152 : vector<16x512xf32>
    %154 = arith.addf %36, %153 : vector<16x512xf32>
    %c0_25 = arith.constant 0 : index
    %c0_26 = arith.constant 0 : index
    %155 = vector.load %arg5[%c0_25, %c0_26] : memref<16x512xf32, #tpu.memory_space<vmem>>, vector<16x512xf32>
    tpu.vector_store %arg5[%c0_25, %c0_26], %154 {strides = array<i32>} : memref<16x512xf32, #tpu.memory_space<vmem>>, vector<16x512xf32>,
    return
  }
}

</mosaic_0001>

<bundles_post_ra>
// kernel: tpu_custom_call.1
= control target key start
LH: loop header
LB: loop body
LE: loop exit
PB: predicated region body
PF: predicated region fallthrough
CT: control target
= control target key end

     0   :  { %v2134_v1 = vmov 0   ;;  %s2128_s0 = inlined_call_operand.vmem [shape: f32[8,512], index: 0, kind: input, shape index: {}]   ;;  %s2129_s1 = inlined_call_operand.vmem [shape: f32[128,1], index: 1, kind: input, shape index: {}]   ;;  %s2130_s2 = inlined_call_operand.vmem [shape: f32[24,13], index: 2, kind: input, shape index: {}]   ;;  %s2131_s3 = inlined_call_operand.vmem [shape: f32[8,512], index: 3, kind: input, shape index: {}]   ;;  %s2132_s4 = inlined_call_operand.vmem [shape: bf16[48,16], index: 4, kind: input, shape index: {}]   ;;  %s2133_s5 = inlined_call_operand.hbm [shape: f32[16,512], index: 5, kind: output, shape index: {}]  }
   0x1   :  { %v22_v0 = vld [vmem:[%s2129_s1] sm:$0xff]  ;;  %1207 = vset.pattern.permute.xlu0 %v2134_v1  ;;  %163 = vmatprep.mubr.bf16.mxu0 %v2134_v1  ;;  %v23_v2 = vld [vmem:[%s2129_s1 + $0x8] sm:$0xff] }
   0x2   :  { %57 = vperm.xlu0 %1207, %v22_v0   ;;  %216 = vmatprep.mubr.bf16.mxu1 %v2134_v1 }
   0x3   :  { %1208 = vset.pattern.permute.xlu1 %v2134_v1 }
   0x4   :  { %10 = vsyncpa [#allocation3], 0  ;;  %v24_v3 = vld [vmem:[%s2129_s1 + $0x10] sm:$0xff]  ;;  %v38_v4 = vld [vmem:[%s2130_s2] sm:$0xff]  ;;  %v1275_v5 = vmov 1   ;;  %v1276_v8 = vmov 2   ;;  %v245_v41 = vlaneseq }
   0x5   :  { %83 = vperm.xlu1 %1208, %v24_v3   ;;  %v25_v6 = vld [vmem:[%s2129_s1 + $0x18] sm:$0xff]  ;;  %v39_v7 = vld [vmem:[%s2130_s2 + $0x8] sm:$0xff]  ;;  %v1277_v9 = vmov 4   ;;  %v1278_v10 = vmov 6   ;;  %v1279_v11 = vmov 5   ;;  %v1280_v12 = vmov 3  }
   0x6   :  { %66 = vperm.xlu0 %1207, %v23_v2   ;;  %v1281_v13 = vmov 8   ;;  %v1282_v14 = vmov 7   ;;  %v52_v15 = vld [vmem:[%s2128_s0 + $0x8] sm:$0xff]  ;;  %v54_v17 = vld [vmem:[%s2128_s0 + $0x18] sm:$0xff]  ;;  %v51_v18 = vld [vmem:[%s2128_s0] sm:$0xff]  ;;  %vm118_vm0 = vcmask 1043456  }
   0x7   :  { %v53_v19 = vld [vmem:[%s2128_s0 + $0x10] sm:$0xff]  ;;  %v1225_v39 = vld [vmem:[%s2132_s4] sm:$0xff]   ;;  %vm111_vm1 = vcmask 64512   ;;  %v1374_v44 = vshrl.u32 %v245_v41, 7  ;;  %v1385_v59 = vld [vmem:[%s2131_s3 + $0x8] sm:$0xff]  ;;  %s1283_s20 = smov 16  }
   0x8   :  { %v1380_v50 = vld [vmem:[%s2131_s3] sm:$0xff]  ;;  %v1390_v60 = vld [vmem:[%s2131_s3 + $0x18] sm:$0xff]  ;;  %s1284_s21 = smov 17   ;;  %s1285_s22 = smov 112   ;;  %vm781_vm10 = vcmask 89160   ;;  %vm811_vm11 = vcmask 15360  }
   0x9   :  { %88 = vperm.xlu1 %1208, %v25_v6   ;;  %v247_v47 = vsub.s32 2, %v1374_v44  ;;  %s1286_s25 = smov 15   ;;  %s1287_s26 = smov 1   ;;  %vm1024_vm12 = vcmask 130048  }
   0xa   :  { %1209 = vset.pattern.permute.xlu0 %v1275_v5  ;;  %s1288_s27 = smov 113   ;;  %s1289_s28 = smov 127  }
   0xb   :  { %364 = vperm.xlu0 %1209, %v38_v4   ;;  %v248_v2 = vrot.slane %v1380_v50, %v247_v47  ;;  %s1290_s29 = smov 111   ;;  %s1291_s14 = smov 2  }
   0xc   :  { %s1292_s15 = smov 117   ;;  %s1293_s18 = smov [#allocation2]  }
   0xd   :  { %327 = vperm.xlu1 %1208, %v39_v7   ;;  %s1135_s19 = sshll.u32 %s1293_s18, 4  ;;  %s1136_s19 = int_to_ptr.vmem [resolvable:$true] %s1135_s19 }
   0xe   :  { %p1255_p1 = scmp.lt.s32.totalorder %s1136_s19, %s1136_s19 }
   0xf   :  { %1212 = vset.pattern.permute.xlu0 %v1276_v8 }
  0x10   :  { %417 = vperm.xlu0 %1212, %v39_v7  }
  0x11   :  { %1210 = vset.pattern.permute.xlu1 %v1275_v5 }
  0x12   :  { %368 = vperm.xlu1 %1210, %v39_v7  }
  0x14   :  { %1214 = vset.pattern.permute.xlu0 %v1277_v9 }
  0x15   :  { %502 = vperm.xlu0 %1214, %v38_v4  }
  0x16   :  { %1211 = vset.pattern.permute.xlu1 %v1276_v8 }
  0x17   :  { %413 = vperm.xlu1 %1211, %v38_v4  }
  0x19   :  { %1217 = vset.pattern.permute.xlu0 %v1278_v10 }
  0x1a   :  { %612 = vperm.xlu0 %1217, %v39_v7  }
  0x1b   :  { %1213 = vset.pattern.permute.xlu1 %v1280_v12 }
  0x1c   :  { %486 = vperm.xlu1 %1213, %v38_v4  }
  0x1e   :  { %1219 = vset.pattern.permute.xlu0 %v1279_v11 }
  0x1f   :  { %551 = vperm.xlu0 %1219, %v38_v4  }
  0x20   :  { %490 = vperm.xlu1 %1213, %v39_v7  }
  0x23   :  { %1222 = vset.pattern.permute.xlu0 %v1281_v13 }
  0x24   :  { %702 = vperm.xlu0 %1222, %v39_v7   ;;  %1215 = vset.pattern.permute.xlu1 %v1277_v9  ;;  %v252_v9 = vrot.slane %v1385_v59, %v247_v47 }
  0x25   :  { %506 = vperm.xlu1 %1215, %v39_v7  }
  0x28   :  { %1223 = vset.pattern.permute.xlu0 %v2134_v1 }
  0x29   :  { %322 = vperm.xlu0 %1223, %v38_v4   ;;  %1216 = vset.pattern.permute.xlu1 %v1278_v10  ;;  %v260_v10 = vrot.slane %v1390_v60, %v247_v47 }
  0x2a   :  { %608 = vperm.xlu1 %1216, %v38_v4  }
  0x2e   :  { %1218 = vset.pattern.permute.xlu1 %v1282_v14 }
  0x2f   :  { %649 = vperm.xlu1 %1218, %v38_v4  }
  0x33   :  { %653 = vperm.xlu1 %1218, %v39_v7  }
  0x37   :  { %1220 = vset.pattern.permute.xlu1 %v1279_v11 }
  0x38   :  { %555 = vperm.xlu1 %1220, %v39_v7  }
  0x3c   :  { %1221 = vset.pattern.permute.xlu1 %v1281_v13 }
  0x3d   :  { %698 = vperm.xlu1 %1221, %v38_v4  }
  0x41   :  { %1224 = vset.pattern.permute.xlu1 %v2134_v1 }
  0x81   :  { %v58_v16 = vpop.permute.xlu0 %57 }
  0x82   :  { %v61_v20 = vmul.f32 %v58_v16, %v52_v15  ;;  %v63_v21 = vmul.f32 %v58_v16, %v54_v17  ;;  %v60_v22 = vmul.f32 %v58_v16, %v51_v18  ;;  %v62_v23 = vmul.f32 %v58_v16, %v53_v19 }
  0x84   :  { %v84_v42 = vpop.permute.xlu1 %83 }
  0x85   :  { %v67_v24 = vpop.permute.xlu0 %66 }
  0x86   :  { %v70_v25 = vadd.f32 %v67_v24, %v61_v20  ;;  %v72_v26 = vadd.f32 %v67_v24, %v63_v21  ;;  %v69_v27 = vadd.f32 %v67_v24, %v60_v22  ;;  %v71_v28 = vadd.f32 %v67_v24, %v62_v23  ;;  %v1445_v24 = vld [vmem:[%s2131_s3 + $0x10] sm:$0xff] }
  0x88   :  { %v74_v29 = vmax.f32 %v70_v25, 0.0  ;;  %v76_v30 = vmax.f32 %v72_v26, 0.0  ;;  %v73_v31 = vmax.f32 %v69_v27, 0.0  ;;  %v75_v32 = vmax.f32 %v71_v28, 0.0  ;;  %v89_v45 = vpop.permute.xlu1 %88 }
  0x89   :  { %v256_v25 = vrot.slane %v1445_v24, %v247_v47  ;;  %v271_v26 = vsub.s32 3, %v1374_v44 }
  0x8a   :  { %v78_v33 = vpack.c.bf16 %v74_v29, %v74_v29  ;;  %v80_v34 = vpack.c.bf16 %v76_v30, %v76_v30  ;;  %v77_v35 = vpack.c.bf16 %v73_v31, %v73_v31  ;;  %v79_v36 = vpack.c.bf16 %v75_v32, %v75_v32  ;;  %v1369_v40 = vpop.permute.xlu0 %364 }
  0x8b   :  { %v272_v28 = vrot.slane %v1380_v50, %v271_v26  ;;  %v280_v30 = vrot.slane %v1445_v24, %v271_v26  ;;  %v284_v47 = vrot.slane %v1390_v60, %v271_v26 }
  0x8c   :  { %1148 = vmatprep.subr.msk.bf16.mxu0 %vm118_vm0, %v78_v33  ;;  %1151 = vmatprep.subr.msk.bf16.mxu1 %vm118_vm0, %v80_v34  ;;  %v120_v37 = vsel %vm118_vm0, %v77_v35, 0  ;;  %v126_v38 = vsel %vm118_vm0, %v79_v36, 0  ;;  %v1473_v36 = vpop.permute.xlu1 %327 }
  0x8d   :  { %132 = vmatpush1.bf16.msra.mxu0 %v120_v37  ;;  %185 = vmatpush1.bf16.msra.mxu1 %v126_v38 }
  0x8f   :  { %v1371_v43 = vpop.permute.xlu0 %417 }
  0x90   :  { %1149 = vmatmul.mubr.msk.bf16.vlgmr.msra.gmra.mrb[0].mxu0 %vm111_vm1, %v1225_v39  ;;  %1152 = vmatmul.mubr.msk.bf16.vlgmr.msra.gmra.mrb[0].mxu1 %vm111_vm1, %v1225_v39 }
  0x91   :  { %173 = vmatprep.mubr.bf16.mxu0 %v2134_v1  ;;  %226 = vmatprep.mubr.bf16.mxu1 %v2134_v1  ;;  %v1477_v37 = vpop.permute.xlu1 %368 }
  0x94   :  { %v503_v46 = vpop.permute.xlu0 %502 }
  0x96   :  { %v1483_v38 = vpop.permute.xlu1 %413 }
  0x9b   :  { %v1487_v39 = vpop.permute.xlu1 %486 }
 0x163   :  { %v165_v48 = vpop.f32.mrb[0].mxu0  ;;  %v218_v49 = vpop.f32.mrb[0].mxu1 }
 0x164   :  { %v166_v51 = vadd.f32 %v165_v48, %v84_v42  ;;  %v219_v52 = vadd.f32 %v218_v49, %v84_v42  ;;  %v167_v53 = vpop.f32.mrb[1].mxu0  ;;  %v220_v54 = vpop.f32.mrb[1].mxu1 }
 0x165   :  { %v168_v55 = vadd.f32 %v167_v53, %v84_v42  ;;  %v221_v56 = vadd.f32 %v220_v54, %v84_v42  ;;  %v169_v57 = vpop.f32.mrb[2].mxu0  ;;  %v222_v58 = vpop.f32.mrb[2].mxu1 }
 0x166   :  { %v237_v61 = vmax.f32 %v166_v51, 0.0  ;;  %v239_v62 = vmax.f32 %v219_v52, 0.0  ;;  %v171_v63 = vpop.f32.mrb[3].mxu0  ;;  %v224_v0 = vpop.f32.mrb[3].mxu1  ;;  %v170_v15 = vadd.f32 %v169_v57, %v89_v45  ;;  %v223_v22 = vadd.f32 %v222_v58, %v89_v45 }
 0x167   :  { %v1393_v3 = vmax.f32 %v168_v55, 0.0  ;;  %v1395_v4 = vmax.f32 %v221_v56, 0.0  ;;  %v172_v5 = vadd.f32 %v171_v63, %v89_v45  ;;  %v225_v6 = vadd.f32 %v224_v0, %v89_v45  ;;  %v1494_v42 = vpop.permute.xlu1 %490  ;;  %v1512_v52 = vpop.permute.xlu0 %612 }
 0x168   :  { %v1397_v7 = vmul.f32 %v503_v46, %v237_v61  ;;  %v1399_v8 = vmul.f32 %v503_v46, %v239_v62  ;;  %338 = vrot.lane.b32.xlu0 %v237_v61, %s1283_s20  ;;  %v261_v16 = vmul.f32 %v248_v2, %v237_v61  ;;  %v1428_v21 = vmax.f32 %v170_v15, 0.0  ;;  %2150 = vst [vmem:[#allocation5_spill] sm:$0xff] %v1512_v52 }
 0x169   :  { %v1404_v11 = vmax.f32 %v172_v5, 0.0  ;;  %v1406_v12 = vmax.f32 %v225_v6, 0.0  ;;  %v1409_v13 = vmul.f32 %v503_v46, %v1393_v3  ;;  %v1412_v14 = vmul.f32 %v503_v46, %v1395_v4 }
 0x16a   :  { %293 = vrot.lane.b32.xlu1 %v261_v16, %s1284_s21  ;;  %v1417_v17 = vmul.f32 %v252_v9, %v1393_v3  ;;  %v1420_v18 = vmul.f32 %v260_v10, %v1395_v4  ;;  %v1432_v23 = vmax.f32 %v223_v22, 0.0  ;;  %v263_v27 = vmul.f32 %v256_v25, %v239_v62 }
 0x16b   :  { %v1423_v19 = vmul.f32 %v252_v9, %v1404_v11  ;;  %v1426_v20 = vmul.f32 %v260_v10, %v1406_v12  ;;  %v285_v29 = vmul.f32 %v272_v28, %v237_v61  ;;  %v265_v31 = vmul.f32 %v248_v2, %v1428_v21  ;;  %v1502_v48 = vpop.permute.xlu1 %506  ;;  %v1524_v55 = vpop.permute.xlu0 %551 }
 0x16c   :  { %346 = vrot.lane.b32.xlu0 %v239_v62, %s1283_s20  ;;  %v287_v32 = vmul.f32 %v280_v30, %v239_v62  ;;  %v267_v33 = vmul.f32 %v256_v25, %v1432_v23  ;;  %v289_v34 = vmul.f32 %v272_v28, %v1428_v21  ;;  %v291_v35 = vmul.f32 %v280_v30, %v1432_v23 }
 0x16d   :  { %v276_v45 = vrot.slane %v1385_v59, %v271_v26  ;;  %v288_v49 = vmul.f32 %v284_v47, %v1395_v4  ;;  %2151 = vst [vmem:[#allocation6_spill] sm:$0xff] %v1524_v55  ;;  %v292_v56 = vmul.f32 %v284_v47, %v1406_v12  ;;  %v1561_v9 = vand.u32 127, %v245_v41  ;;  %v29_v41 = vld [vmem:[%s2129_s1 + $0x38] sm:$0xff] }
 0x16e   :  { %340 = vrot.lane.b32.xlu1 %v1428_v21, %s1283_s20 }
 0x16f   :  { %v286_v46 = vmul.f32 %v276_v45, %v1393_v3  ;;  %v1510_v51 = vpop.permute.xlu1 %608  ;;  %v290_v53 = vmul.f32 %v276_v45, %v1404_v11  ;;  %v1532_v58 = vpop.permute.xlu0 %702  ;;  %vm354_vm2 = vcmp.lt.s32.totalorder %v1561_v9, 16  ;;  %vm639_vm3 = vcmp.lt.s32.totalorder %v1561_v9, 112 }
 0x170   :  { %623 = vrot.lane.b32.xlu0 %v237_v61, %s1285_s22  ;;  %2153 = vst [vmem:[#allocation8_spill] sm:$0xff] %v1532_v58  ;;  %vm311_vm4 = vcmp.lt.s32.totalorder %v1561_v9, 17  ;;  %vm403_vm5 = vcmp.lt.s32.totalorder %v1561_v9, 15  ;;  %vm476_vm6 = vcmp.lt.s32.totalorder %v1561_v9, 1  ;;  %vm598_vm7 = vcmp.lt.s32.totalorder %v1561_v9, 113 }
 0x171   :  { %vm541_vm8 = vcmp.lt.s32.totalorder %v1561_v9, 127  ;;  %vm688_vm9 = vcmp.lt.s32.totalorder %v1561_v9, 111 }
 0x172   :  { %348 = vrot.lane.b32.xlu1 %v1432_v23, %s1283_s20 }
 0x173   :  { %v1519_v54 = vpop.permute.xlu1 %649 }
 0x174   :  { %631 = vrot.lane.b32.xlu0 %v239_v62, %s1285_s22  ;;  %v1543_v62 = vpop.permute.xlu0 %322 }
 0x176   :  { %625 = vrot.lane.b32.xlu1 %v1428_v21, %s1285_s22 }
 0x177   :  { %v1530_v57 = vpop.permute.xlu1 %653 }
 0x178   :  { %342 = vrot.lane.b32.xlu0 %v1393_v3, %s1283_s20  ;;  %2152 = vst [vmem:[#allocation7_spill] sm:$0xff] %v1530_v57 }
 0x17a   :  { %633 = vrot.lane.b32.xlu1 %v1432_v23, %s1285_s22 }
 0x17b   :  { %v1538_v61 = vpop.permute.xlu1 %555 }
 0x17c   :  { %350 = vrot.lane.b32.xlu0 %v1395_v4, %s1283_s20  ;;  %2154 = vst [vmem:[#allocation9_spill] sm:$0xff] %v1538_v61 }
 0x17e   :  { %344 = vrot.lane.b32.xlu1 %v1404_v11, %s1283_s20 }
 0x17f   :  { %v1547_v63 = vpop.permute.xlu1 %698 }
 0x180   :  { %627 = vrot.lane.b32.xlu0 %v1393_v3, %s1285_s22  ;;  %2155 = vst [vmem:[#allocation10_spill] sm:$0xff] %v1547_v63 }
 0x182   :  { %352 = vrot.lane.b32.xlu1 %v1406_v12, %s1283_s20 }
 0x184   :  { %635 = vrot.lane.b32.xlu0 %v1395_v4, %s1285_s22  ;;  %v28_v4 = vld [vmem:[%s2129_s1 + $0x30] sm:$0xff] }
 0x186   :  { %629 = vrot.lane.b32.xlu1 %v1404_v11, %s1285_s22 }
 0x188   :  { %301 = vrot.lane.b32.xlu0 %v263_v27, %s1284_s21 }
 0x18a   :  { %637 = vrot.lane.b32.xlu1 %v1406_v12, %s1285_s22 }
 0x18c   :  { %387 = vrot.lane.b32.xlu0 %v285_v29, %s1286_s25 }
 0x18e   :  { %295 = vrot.lane.b32.xlu1 %v265_v31, %s1284_s21 }
 0x190   :  { %395 = vrot.lane.b32.xlu0 %v287_v32, %s1286_s25 }
 0x192   :  { %303 = vrot.lane.b32.xlu1 %v267_v33, %s1284_s21 }
 0x194   :  { %460 = vrot.lane.b32.xlu0 %v261_v16, %s1287_s26 }
 0x196   :  { %389 = vrot.lane.b32.xlu1 %v289_v34, %s1286_s25 }
 0x198   :  { %468 = vrot.lane.b32.xlu0 %v263_v27, %s1287_s26 }
 0x19a   :  { %397 = vrot.lane.b32.xlu1 %v291_v35, %s1286_s25 }
 0x19c   :  { %582 = vrot.lane.b32.xlu0 %v261_v16, %s1288_s27 }
 0x19e   :  { %462 = vrot.lane.b32.xlu1 %v265_v31, %s1287_s26 }
 0x1a0   :  { %590 = vrot.lane.b32.xlu0 %v263_v27, %s1288_s27 }
 0x1a2   :  { %470 = vrot.lane.b32.xlu1 %v267_v33, %s1287_s26 }
 0x1a4   :  { %525 = vrot.lane.b32.xlu0 %v285_v29, %s1289_s28 }
 0x1a6   :  { %584 = vrot.lane.b32.xlu1 %v265_v31, %s1288_s27 }
 0x1a8   :  { %533 = vrot.lane.b32.xlu0 %v287_v32, %s1289_s28 }
 0x1aa   :  { %592 = vrot.lane.b32.xlu1 %v267_v33, %s1288_s27 }
 0x1ac   :  { %672 = vrot.lane.b32.xlu0 %v285_v29, %s1290_s29 }
 0x1ae   :  { %527 = vrot.lane.b32.xlu1 %v289_v34, %s1289_s28 }
 0x1b0   :  { %680 = vrot.lane.b32.xlu0 %v287_v32, %s1290_s29 }
 0x1b2   :  { %535 = vrot.lane.b32.xlu1 %v291_v35, %s1289_s28 }
 0x1b4   :  { %297 = vrot.lane.b32.xlu0 %v1417_v17, %s1284_s21 }
 0x1b6   :  { %674 = vrot.lane.b32.xlu1 %v289_v34, %s1290_s29 }
 0x1b8   :  { %305 = vrot.lane.b32.xlu0 %v1420_v18, %s1284_s21 }
 0x1ba   :  { %682 = vrot.lane.b32.xlu1 %v291_v35, %s1290_s29 }
 0x1bc   :  { %391 = vrot.lane.b32.xlu0 %v286_v46, %s1286_s25 }
 0x1be   :  { %299 = vrot.lane.b32.xlu1 %v1423_v19, %s1284_s21 }
 0x1c0   :  { %399 = vrot.lane.b32.xlu0 %v288_v49, %s1286_s25 }
 0x1c2   :  { %307 = vrot.lane.b32.xlu1 %v1426_v20, %s1284_s21 }
 0x1c4   :  { %464 = vrot.lane.b32.xlu0 %v1417_v17, %s1287_s26 }
 0x1c6   :  { %393 = vrot.lane.b32.xlu1 %v290_v53, %s1286_s25 }
 0x1c8   :  { %472 = vrot.lane.b32.xlu0 %v1420_v18, %s1287_s26 }
 0x1ca   :  { %401 = vrot.lane.b32.xlu1 %v292_v56, %s1286_s25 }
 0x1cc   :  { %586 = vrot.lane.b32.xlu0 %v1417_v17, %s1288_s27 }
 0x1ce   :  { %466 = vrot.lane.b32.xlu1 %v1423_v19, %s1287_s26 }
 0x1d0   :  { %594 = vrot.lane.b32.xlu0 %v1420_v18, %s1288_s27 }
 0x1d2   :  { %474 = vrot.lane.b32.xlu1 %v1426_v20, %s1287_s26 }
 0x1d4   :  { %529 = vrot.lane.b32.xlu0 %v286_v46, %s1289_s28 }
 0x1d6   :  { %588 = vrot.lane.b32.xlu1 %v1423_v19, %s1288_s27 }
 0x1d8   :  { %537 = vrot.lane.b32.xlu0 %v288_v49, %s1289_s28 }
 0x1da   :  { %v339_v0 = vpop.permute.xlu0 %338  ;;  %596 = vrot.lane.b32.xlu1 %v1426_v20, %s1288_s27 }
 0x1dc   :  { %676 = vrot.lane.b32.xlu0 %v286_v46, %s1290_s29  ;;  %v1553_v2 = vpop.permute.xlu1 %293 }
 0x1de   :  { %v347_v3 = vpop.permute.xlu0 %346  ;;  %531 = vrot.lane.b32.xlu1 %v290_v53, %s1289_s28 }
 0x1e0   :  { %684 = vrot.lane.b32.xlu0 %v288_v49, %s1290_s29  ;;  %v341_v5 = vpop.permute.xlu1 %340 }
 0x1e2   :  { %v624_v6 = vpop.permute.xlu0 %623  ;;  %539 = vrot.lane.b32.xlu1 %v292_v56, %s1289_s28 }
 0x1e4   :  { %755 = vperm.xlu0 %1223, %v28_v4   ;;  %v349_v10 = vpop.permute.xlu1 %348 }
 0x1e6   :  { %v632_v15 = vpop.permute.xlu0 %631  ;;  %678 = vrot.lane.b32.xlu1 %v290_v53, %s1290_s29 }
 0x1e8   :  { %v626_v16 = vpop.permute.xlu1 %625 }
 0x1ea   :  { %v343_v17 = vpop.permute.xlu0 %342  ;;  %686 = vrot.lane.b32.xlu1 %v292_v56, %s1290_s29 }
 0x1eb   :  { %v357_v18 = vsel %vm354_vm2, %v343_v17, %v347_v3  ;;  %v359_v19 = vsel %vm354_vm2, %v339_v0, %v343_v17 }
 0x1ec   :  { %v634_v20 = vpop.permute.xlu1 %633 }
 0x1ee   :  { %v351_v22 = vpop.permute.xlu0 %350  ;;  %760 = vperm.xlu1 %1224, %v29_v41  }
 0x1ef   :  { %v355_v25 = vsel %vm354_vm2, %v347_v3, %v351_v22  ;;  %v361_v26 = vsel %vm354_vm2, %v351_v22, %v339_v0 }
 0x1f0   :  { %v345_v27 = vpop.permute.xlu1 %344 }
 0x1f1   :  { %v1581_v29 = vsel %vm354_vm2, %v345_v27, %v349_v10  ;;  %v1585_v30 = vsel %vm354_vm2, %v341_v5, %v345_v27 }
 0x1f2   :  { %v628_v28 = vpop.permute.xlu0 %627 }
 0x1f3   :  { %v1589_v31 = vsel %vm639_vm3, %v628_v28, %v632_v15  ;;  %v1593_v32 = vsel %vm639_vm3, %v624_v6, %v628_v28 }
 0x1f4   :  { %v353_v33 = vpop.permute.xlu1 %352 }
 0x1f5   :  { %v1597_v35 = vsel %vm354_vm2, %v349_v10, %v353_v33  ;;  %v1601_v45 = vsel %vm354_vm2, %v353_v33, %v341_v5 }
 0x1f6   :  { %v636_v34 = vpop.permute.xlu0 %635 }
 0x1f7   :  { %v1605_v46 = vsel %vm639_vm3, %v632_v15, %v636_v34  ;;  %v1609_v47 = vsel %vm639_vm3, %v636_v34, %v624_v6 }
 0x1f8   :  { %v630_v49 = vpop.permute.xlu1 %629 }
 0x1f9   :  { %v1613_v56 = vsel %vm639_vm3, %v630_v49, %v634_v20  ;;  %v1617_v0 = vsel %vm639_vm3, %v626_v16, %v630_v49 }
 0x1fa   :  { %v302_v53 = vpop.permute.xlu0 %301  ;;  %2156 = vst [vmem:[#allocation11_spill] sm:$0xff] %v1613_v56 }
 0x1fc   :  { %v638_v3 = vpop.permute.xlu1 %637 }
 0x1fd   :  { %v1621_v5 = vsel %vm639_vm3, %v634_v20, %v638_v3  ;;  %v1625_v6 = vsel %vm639_vm3, %v638_v3, %v626_v16 }
 0x1fe   :  { %v388_v4 = vpop.permute.xlu0 %387  ;;  %2157 = vst [vmem:[#allocation12_spill] sm:$0xff] %v1621_v5  ;;  %2158 = vst [vmem:[#allocation13_spill] sm:$0xff] %v1625_v6 }
 0x200   :  { %v1627_v10 = vpop.permute.xlu1 %295 }
 0x202   :  { %v396_v15 = vpop.permute.xlu0 %395 }
 0x204   :  { %v1629_v17 = vpop.permute.xlu1 %303 }
 0x206   :  { %v1631_v41 = vpop.permute.xlu0 %460 }
 0x208   :  { %v1633_v22 = vpop.permute.xlu1 %389 }
 0x20a   :  { %v1635_v27 = vpop.permute.xlu0 %468 }
 0x20c   :  { %v1637_v28 = vpop.permute.xlu1 %397 }
 0x20e   :  { %v1639_v33 = vpop.permute.xlu0 %582 }
 0x210   :  { %v1641_v20 = vpop.permute.xlu1 %462 }
 0x212   :  { %v1643_v34 = vpop.permute.xlu0 %590 }
 0x214   :  { %v1645_v16 = vpop.permute.xlu1 %470 }
 0x216   :  { %v1647_v49 = vpop.permute.xlu0 %525 }
 0x217   :  { %2159 = vst [vmem:[#allocation14_spill] sm:$0xff] %v1647_v49 }
 0x218   :  { %v1649_v3 = vpop.permute.xlu1 %584 }
 0x219   :  { %2160 = vst [vmem:[#allocation15_spill] sm:$0xff] %v1649_v3 }
 0x21a   :  { %v1651_v1 = vpop.permute.xlu0 %533 }
 0x21b   :  { %2161 = vst [vmem:[#allocation16_spill] sm:$0xff] %v1651_v1 }
 0x21c   :  { %v1653_v58 = vpop.permute.xlu1 %592 }
 0x21d   :  { %2162 = vst [vmem:[#allocation17_spill] sm:$0xff] %v1653_v58  ;;  %v372_v58 = vmul.f32 %v1369_v40, %v359_v19  ;;  %v374_v19 = vmul.f32 %v1369_v40, %v355_v25 }
 0x21e   :  { %v1655_v61 = vpop.permute.xlu0 %672 }
 0x21f   :  { %2163 = vst [vmem:[#allocation18_spill] sm:$0xff] %v1655_v61  ;;  %v373_v61 = vmul.f32 %v1369_v40, %v357_v18  ;;  %v371_v18 = vmul.f32 %v1369_v40, %v361_v26 }
 0x220   :  { %v1657_v63 = vpop.permute.xlu1 %527 }
 0x221   :  { %2164 = vst [vmem:[#allocation19_spill] sm:$0xff] %v1657_v63 }
 0x222   :  { %v1659_v52 = vpop.permute.xlu0 %680 }
 0x223   :  { %2165 = vst [vmem:[#allocation20_spill] sm:$0xff] %v1659_v52 }
 0x224   :  { %v1662_v6 = vpop.permute.xlu1 %535 }
 0x225   :  { %2166 = vst [vmem:[#allocation21_spill] sm:$0xff] %v1662_v6 }
 0x226   :  { %v298_v5 = vpop.permute.xlu0 %297 }
 0x227   :  { %v314_v55 = vsel %vm311_vm4, %v298_v5, %v302_v53  ;;  %v316_v3 = vsel %vm311_vm4, %v1553_v2, %v298_v5 }
 0x228   :  { %v331_v63 = vmul.f32 %v1543_v62, %v316_v3  ;;  %v332_v52 = vmul.f32 %v1543_v62, %v314_v55  ;;  %v1673_v56 = vpop.permute.xlu1 %674 }
 0x22a   :  { %v380_v49 = vadd.f32 %v372_v58, %v331_v63  ;;  %v381_v1 = vadd.f32 %v373_v61, %v332_v52  ;;  %v306_v6 = vpop.permute.xlu0 %305 }
 0x22b   :  { %v312_v57 = vsel %vm311_vm4, %v302_v53, %v306_v6  ;;  %v318_v5 = vsel %vm311_vm4, %v306_v6, %v1553_v2 }
 0x22c   :  { %v330_v55 = vmul.f32 %v1543_v62, %v318_v5  ;;  %v333_v52 = vmul.f32 %v1543_v62, %v312_v57  ;;  %v1685_v63 = vpop.permute.xlu1 %682  ;;  %v1699_v5 = vmul.f32 %v1502_v48, %v1404_v11  ;;  %v377_v11 = vmul.f32 %v1477_v37, %v1581_v29 }
 0x22e   :  { %v379_v58 = vadd.f32 %v371_v18, %v330_v55  ;;  %v382_v61 = vadd.f32 %v374_v19, %v333_v52  ;;  %v392_v3 = vpop.permute.xlu0 %391  ;;  %v376_v55 = vmul.f32 %v1477_v37, %v1585_v30  ;;  %v378_v30 = vmul.f32 %v1477_v37, %v1597_v35 }
 0x22f   :  { %v406_v53 = vsel %vm403_vm5, %v392_v3, %v396_v15  ;;  %v408_v2 = vsel %vm403_vm5, %v388_v4, %v392_v3 }
 0x230   :  { %v421_v6 = vmul.f32 %v1483_v38, %v408_v2  ;;  %v422_v26 = vmul.f32 %v1483_v38, %v406_v53  ;;  %v300_v57 = vpop.permute.xlu1 %299  ;;  %v1718_v53 = vsub.s32 0, %v1374_v44 }
 0x231   :  { %v315_v18 = vsel %vm311_vm4, %v300_v57, %v1629_v17  ;;  %v317_v19 = vsel %vm311_vm4, %v1627_v10, %v300_v57 }
 0x232   :  { %v1693_v40 = vadd.f32 %v421_v6, %v380_v49  ;;  %v1695_v25 = vadd.f32 %v422_v26, %v381_v1  ;;  %v400_v62 = vpop.permute.xlu0 %399  ;;  %v335_v52 = vmul.f32 %v1473_v36, %v317_v19  ;;  %v336_v3 = vmul.f32 %v1473_v36, %v315_v18 }
 0x233   :  { %v404_v49 = vsel %vm403_vm5, %v396_v15, %v400_v62  ;;  %v410_v1 = vsel %vm403_vm5, %v400_v62, %v388_v4  ;;  %v375_v4 = vmul.f32 %v1477_v37, %v1601_v45 }
 0x234   :  { %v420_v2 = vmul.f32 %v1483_v38, %v410_v1  ;;  %v423_v15 = vmul.f32 %v1483_v38, %v404_v49  ;;  %v384_v29 = vadd.f32 %v376_v55, %v335_v52  ;;  %v385_v6 = vadd.f32 %v377_v11, %v336_v3  ;;  %v308_v26 = vpop.permute.xlu1 %307 }
 0x235   :  { %v313_v38 = vsel %vm311_vm4, %v1629_v17, %v308_v26  ;;  %v319_v19 = vsel %vm311_vm4, %v308_v26, %v1627_v10  ;;  %v1749_v49 = vmul.f32 %v1502_v48, %v1432_v23  ;;  %v1753_v10 = vmul.f32 %v1502_v48, %v1428_v21 }
 0x236   :  { %v465_v57 = vpop.permute.xlu0 %464  ;;  %v1727_v62 = vadd.f32 %v420_v2, %v379_v58  ;;  %v1729_v18 = vadd.f32 %v423_v15, %v382_v61  ;;  %v334_v45 = vmul.f32 %v1473_v36, %v319_v19  ;;  %v337_v37 = vmul.f32 %v1473_v36, %v313_v38 }
 0x237   :  { %v479_v35 = vsel %vm476_vm6, %v465_v57, %v1635_v27  ;;  %v481_v58 = vsel %vm476_vm6, %v1631_v41, %v465_v57  ;;  %v1757_v36 = vrot.slane %v1385_v59, %v1718_v53  ;;  %v1761_v3 = vmul.f32 %v1502_v48, %v1406_v12 }
 0x238   :  { %v494_v61 = vmul.f32 %v1487_v39, %v481_v58  ;;  %v495_v17 = vmul.f32 %v1487_v39, %v479_v35  ;;  %v383_v1 = vadd.f32 %v375_v4, %v334_v45  ;;  %v386_v55 = vadd.f32 %v378_v30, %v337_v37  ;;  %v394_v11 = vpop.permute.xlu1 %393 }
 0x239   :  { %v407_v21 = vsel %vm403_vm5, %v394_v11, %v1637_v28  ;;  %v409_v15 = vsel %vm403_vm5, %v1633_v22, %v394_v11  ;;  %v1789_v48 = vrot.slane %v1380_v50, %v1718_v53  ;;  %v1795_v38 = vrot.slane %v1390_v60, %v1718_v53 }
 0x23a   :  { %v473_v52 = vpop.permute.xlu0 %472  ;;  %v1764_v2 = vadd.f32 %v1409_v13, %v494_v61  ;;  %v1767_v23 = vadd.f32 %v1399_v8, %v495_v17  ;;  %v425_v4 = vmul.f32 %v1371_v43, %v409_v15  ;;  %v426_v30 = vmul.f32 %v1371_v43, %v407_v21 }
 0x23b   :  { %v477_v12 = vsel %vm476_vm6, %v1635_v27, %v473_v52  ;;  %v483_v8 = vsel %vm476_vm6, %v473_v52, %v1631_v41  ;;  %v1785_v13 = vrot.slane %v1445_v24, %v1718_v53  ;;  %v1816_v61 = vsub.s32 1, %v1374_v44 }
 0x23c   :  { %v493_v26 = vmul.f32 %v1487_v39, %v483_v8  ;;  %v496_v57 = vmul.f32 %v1487_v39, %v477_v12  ;;  %v1797_v27 = vadd.f32 %v425_v4, %v384_v29  ;;  %v1799_v19 = vadd.f32 %v426_v30, %v385_v6  ;;  %v402_v41 = vpop.permute.xlu1 %401 }
 0x23d   :  { %v405_v39 = vsel %vm403_vm5, %v1637_v28, %v402_v41  ;;  %v411_v29 = vsel %vm403_vm5, %v402_v41, %v1633_v22  ;;  %v658_v4 = vmul.f32 %v1519_v54, %v1605_v46  ;;  %v659_v30 = vmul.f32 %v1519_v54, %v1609_v47 }
 0x23e   :  { %v587_v45 = vpop.permute.xlu0 %586  ;;  %v517_v37 = vadd.f32 %v1397_v7, %v493_v26  ;;  %v1804_v35 = vadd.f32 %v1412_v14, %v496_v57  ;;  %v424_v6 = vmul.f32 %v1371_v43, %v411_v29  ;;  %v427_v58 = vmul.f32 %v1371_v43, %v405_v39  ;;  %v2168_v39 = vld [vmem:[#allocation11_spill] sm:$0xff] }
 0x23f   :  { %v656_v7 = vmul.f32 %v1519_v54, %v1593_v32  ;;  %v657_v14 = vmul.f32 %v1519_v54, %v1589_v31  ;;  %v601_v28 = vsel %vm598_vm7, %v587_v45, %v1643_v34  ;;  %v603_v22 = vsel %vm598_vm7, %v1639_v33, %v587_v45 }
 0x240   :  { %v1828_v43 = vadd.f32 %v424_v6, %v383_v1  ;;  %v1830_v17 = vadd.f32 %v427_v58, %v386_v55  ;;  %v615_v11 = vmul.f32 %v1510_v51, %v603_v22  ;;  %v616_v52 = vmul.f32 %v1510_v51, %v601_v28  ;;  %v467_v32 = vpop.permute.xlu1 %466  ;;  %v2170_v28 = vld [vmem:[#allocation14_spill] sm:$0xff] }
 0x241   :  { %v480_v31 = vsel %vm476_vm6, %v467_v32, %v1645_v16  ;;  %v482_v15 = vsel %vm476_vm6, %v1641_v20, %v467_v32  ;;  %v1865_v47 = vrot.slane %v1380_v50, %v1816_v61  ;;  %v1869_v6 = vrot.slane %v1385_v59, %v1816_v61  ;;  %v2169_v59 = vld [vmem:[#allocation16_spill] sm:$0xff] }
 0x242   :  { %v595_v21 = vpop.permute.xlu0 %594  ;;  %v1850_v12 = vadd.f32 %v656_v7, %v615_v11  ;;  %v1852_v8 = vadd.f32 %v657_v14, %v616_v52  ;;  %v498_v26 = vmul.f32 %v1494_v42, %v482_v15  ;;  %v499_v57 = vmul.f32 %v1494_v42, %v480_v31  ;;  %v2171_v52 = vld [vmem:[#allocation6_spill] sm:$0xff] }
 0x243   :  { %v599_v1 = vsel %vm598_vm7, %v1643_v34, %v595_v21  ;;  %v605_v55 = vsel %vm598_vm7, %v595_v21, %v1639_v33  ;;  %v2167_v33 = vld [vmem:[#allocation7_spill] sm:$0xff]  ;;  %v2172_v21 = vld [vmem:[#allocation12_spill] sm:$0xff] }
 0x244   :  { %v617_v34 = vmul.f32 %v1510_v51, %v599_v1  ;;  %v618_v41 = vmul.f32 %v1510_v51, %v605_v55  ;;  %v660_v45 = vmul.f32 %v2167_v33, %v1617_v0  ;;  %v661_v46 = vmul.f32 %v2167_v33, %v2168_v39  ;;  %v475_v29 = vpop.permute.xlu1 %474  ;;  %v2175_v39 = vld [vmem:[#allocation15_spill] sm:$0xff] }
 0x245   :  { %v1872_v51 = vadd.f32 %v1699_v5, %v498_v26  ;;  %v1875_v0 = vadd.f32 %v1749_v49, %v499_v57  ;;  %v478_v14 = vsel %vm476_vm6, %v1645_v16, %v475_v29  ;;  %v484_v50 = vsel %vm476_vm6, %v475_v29, %v1641_v20  ;;  %v2173_v20 = vld [vmem:[#allocation13_spill] sm:$0xff] }
 0x246   :  { %v530_v54 = vpop.permute.xlu0 %529  ;;  %v1877_v58 = vadd.f32 %v658_v4, %v617_v34  ;;  %v1879_v7 = vadd.f32 %v659_v30, %v618_v41  ;;  %v497_v22 = vmul.f32 %v1494_v42, %v484_v50  ;;  %v500_v11 = vmul.f32 %v1494_v42, %v478_v14  ;;  %v2174_v41 = vld [vmem:[#allocation17_spill] sm:$0xff] }
 0x247   :  { %v544_v5 = vsel %vm541_vm8, %v530_v54, %v2169_v59  ;;  %v546_v49 = vsel %vm541_vm8, %v2170_v28, %v530_v54  ;;  %v662_v31 = vmul.f32 %v2167_v33, %v2172_v21  ;;  %v663_v15 = vmul.f32 %v2167_v33, %v2173_v20  ;;  %v2176_v29 = vld [vmem:[#allocation5_spill] sm:$0xff]  ;;  %v2177_v20 = vld [vmem:[#allocation20_spill] sm:$0xff] }
 0x248   :  { %v558_v32 = vmul.f32 %v2171_v52, %v546_v49  ;;  %v559_v16 = vmul.f32 %v2171_v52, %v544_v5  ;;  %v453_v1 = vmul.f32 %v1757_v36, %v1693_v40  ;;  %v452_v55 = vmul.f32 %v1789_v48, %v1727_v62  ;;  %v589_v4 = vpop.permute.xlu1 %588 }
 0x249   :  { %v521_v42 = vadd.f32 %v1753_v10, %v497_v22  ;;  %v1907_v26 = vadd.f32 %v1761_v3, %v500_v11  ;;  %v602_v33 = vsel %vm598_vm7, %v589_v4, %v2174_v41  ;;  %v604_v40 = vsel %vm598_vm7, %v2175_v39, %v589_v4 }
 0x24a   :  { %v538_v30 = vpop.permute.xlu0 %537  ;;  %v566_v57 = vadd.f32 %v558_v32, %v517_v37  ;;  %v567_v34 = vadd.f32 %v559_v16, %v1764_v2  ;;  %v619_v2 = vmul.f32 %v2176_v29, %v604_v40  ;;  %v620_v54 = vmul.f32 %v2176_v29, %v602_v33  ;;  %v2179_v33 = vld [vmem:[#allocation10_spill] sm:$0xff] }
 0x24b   :  { %v542_v62 = vsel %vm541_vm8, %v2169_v59, %v538_v30  ;;  %v548_v10 = vsel %vm541_vm8, %v538_v30, %v2170_v28  ;;  %v454_v14 = vmul.f32 %v1785_v13, %v1695_v25  ;;  %v455_v50 = vmul.f32 %v1795_v38, %v1729_v18 }
 0x24c   :  { %v574_v3 = vadd.f32 %v566_v57, %v452_v55  ;;  %v575_v37 = vadd.f32 %v567_v34, %v453_v1  ;;  %v560_v5 = vmul.f32 %v2171_v52, %v542_v62  ;;  %v561_v59 = vmul.f32 %v2171_v52, %v548_v10  ;;  %v597_v49 = vpop.permute.xlu1 %596  ;;  %v2180_v62 = vld [vmem:[#allocation21_spill] sm:$0xff] }
 0x24d   :  { %v668_v11 = vadd.f32 %v660_v45, %v619_v2  ;;  %v669_v28 = vadd.f32 %v661_v46, %v620_v54  ;;  %v600_v32 = vsel %vm598_vm7, %v2174_v41, %v597_v49  ;;  %v606_v16 = vsel %vm598_vm7, %v597_v49, %v2175_v39  ;;  %v2178_v46 = vld [vmem:[#allocation18_spill] sm:$0xff] }
 0x24e   :  { %v677_v22 = vpop.permute.xlu0 %676  ;;  %v568_v25 = vadd.f32 %v560_v5, %v1767_v23  ;;  %v569_v18 = vadd.f32 %v561_v59, %v1804_v35  ;;  %v621_v21 = vmul.f32 %v2176_v29, %v600_v32  ;;  %v622_v52 = vmul.f32 %v2176_v29, %v606_v16 }
 0x24f   :  { %v691_v45 = vsel %vm688_vm9, %v677_v22, %v2177_v20  ;;  %v693_v1 = vsel %vm688_vm9, %v2178_v46, %v677_v22  ;;  %v1948_v55 = vrot.slane %v1445_v24, %v1816_v61  ;;  %v1952_v23 = vrot.slane %v1390_v60, %v1816_v61  ;;  %v2181_v24 = vld [vmem:[#allocation19_spill] sm:$0xff]  ;;  %v2182_v60 = vld [vmem:[#allocation9_spill] sm:$0xff] }
 0x250   :  { %v576_v35 = vadd.f32 %v568_v25, %v454_v14  ;;  %v577_v4 = vadd.f32 %v569_v18, %v455_v50  ;;  %v670_v30 = vadd.f32 %v662_v31, %v621_v21  ;;  %v671_v57 = vadd.f32 %v663_v15, %v622_v52  ;;  %v532_v34 = vpop.permute.xlu1 %531 }
 0x251   :  { %v705_v39 = vmul.f32 %v2179_v33, %v693_v1  ;;  %v706_v40 = vmul.f32 %v2179_v33, %v691_v45  ;;  %v545_v10 = vsel %vm541_vm8, %v532_v34, %v2180_v62  ;;  %v547_v29 = vsel %vm541_vm8, %v2181_v24, %v532_v34 }
 0x252   :  { %v685_v41 = vpop.permute.xlu0 %684  ;;  %v562_v61 = vmul.f32 %v2182_v60, %v547_v29  ;;  %v563_v2 = vmul.f32 %v2182_v60, %v545_v10  ;;  %v457_v59 = vmul.f32 %v1757_v36, %v1797_v27  ;;  %v456_v49 = vmul.f32 %v1789_v48, %v1828_v43 }
 0x253   :  { %v689_v31 = vsel %vm688_vm9, %v2177_v20, %v685_v41  ;;  %v695_v15 = vsel %vm688_vm9, %v685_v41, %v2178_v46  ;;  %v713_v54 = vadd.f32 %v705_v39, %v1850_v12  ;;  %v714_v14 = vadd.f32 %v706_v40, %v1852_v8  ;;  %v2183_v39 = vld [vmem:[#allocation8_spill] sm:$0xff] }
 0x254   :  { %v707_v50 = vmul.f32 %v2179_v33, %v689_v31  ;;  %v708_v5 = vmul.f32 %v2179_v33, %v695_v15  ;;  %v570_v22 = vadd.f32 %v562_v61, %v521_v42  ;;  %v571_v32 = vadd.f32 %v563_v2, %v1872_v51  ;;  %v540_v16 = vpop.permute.xlu1 %539 }
 0x255   :  { %v737_v25 = vmul.f32 %v1865_v47, %v713_v54  ;;  %v738_v12 = vmul.f32 %v1869_v6, %v714_v14  ;;  %v543_v36 = vsel %vm541_vm8, %v2180_v62, %v540_v16  ;;  %v549_v48 = vsel %vm541_vm8, %v540_v16, %v2181_v24 }
 0x256   :  { %v715_v8 = vadd.f32 %v707_v50, %v1877_v58  ;;  %v716_v18 = vadd.f32 %v708_v5, %v1879_v7  ;;  %v578_v21 = vadd.f32 %v570_v22, %v456_v49  ;;  %v579_v52 = vadd.f32 %v571_v32, %v457_v59 }
 0x257   :  { %v564_v51 = vmul.f32 %v2182_v60, %v543_v36  ;;  %v565_v58 = vmul.f32 %v2182_v60, %v549_v48  ;;  %v458_v7 = vmul.f32 %v1785_v13, %v1799_v19  ;;  %v459_v42 = vmul.f32 %v1795_v38, %v1830_v17 }
 0x258   :  { %v739_v27 = vmul.f32 %v1948_v55, %v715_v8  ;;  %v740_v43 = vmul.f32 %v1952_v23, %v716_v18  ;;  %v679_v20 = vpop.permute.xlu1 %678  ;;  %v745_v45 = vadd.f32 %v737_v25, %v574_v3  ;;  %v746_v46 = vadd.f32 %v738_v12, %v575_v37  ;;  %v1244_v12 = vld [vmem:[%s2130_s2] sm:$0xff] }
 0x259   :  { %v572_v1 = vadd.f32 %v564_v51, %v1875_v0  ;;  %v573_v34 = vadd.f32 %v565_v58, %v1907_v26  ;;  %v692_v41 = vsel %vm688_vm9, %v679_v20, %v1685_v63  ;;  %v694_v33 = vsel %vm688_vm9, %v1673_v56, %v679_v20 }
 0x25a   :  { %v709_v13 = vmul.f32 %v2183_v39, %v694_v33  ;;  %v710_v19 = vmul.f32 %v2183_v39, %v692_v41  ;;  %v747_v38 = vadd.f32 %v739_v27, %v576_v35  ;;  %v748_v17 = vadd.f32 %v740_v43, %v577_v4 }
 0x25b   :  { %v580_v3 = vadd.f32 %v572_v1, %v458_v7  ;;  %v581_v37 = vadd.f32 %v573_v34, %v459_v42 }
 0x25c   :  { %v717_v40 = vadd.f32 %v709_v13, %v668_v11  ;;  %v718_v0 = vadd.f32 %v710_v19, %v669_v28  ;;  %v687_v62 = vpop.permute.xlu1 %686 }
 0x25d   :  { %v690_v26 = vsel %vm688_vm9, %v1685_v63, %v687_v62  ;;  %v696_v10 = vsel %vm688_vm9, %v687_v62, %v1673_v56 }
 0x25e   :  { %v741_v24 = vmul.f32 %v1865_v47, %v717_v40  ;;  %v742_v29 = vmul.f32 %v1869_v6, %v718_v0  ;;  %v711_v35 = vmul.f32 %v2183_v39, %v690_v26  ;;  %v712_v4 = vmul.f32 %v2183_v39, %v696_v10 }
 0x260   :  { %v719_v60 = vadd.f32 %v711_v35, %v670_v30  ;;  %v720_v11 = vadd.f32 %v712_v4, %v671_v57  ;;  %v749_v28 = vadd.f32 %v741_v24, %v578_v21  ;;  %v750_v61 = vadd.f32 %v742_v29, %v579_v52  ;;  %v1245_v52 = vld [vmem:[%s2130_s2 + $0x8] sm:$0xff] }
 0x262   :  { %v743_v31 = vmul.f32 %v1948_v55, %v719_v60  ;;  %v744_v63 = vmul.f32 %v1952_v23, %v720_v11 }
 0x263   :  { %v756_v2 = vpop.permute.xlu0 %755 }
 0x264   :  { %v2019_v15 = vadd.f32 %v756_v2, %v745_v45  ;;  %v2021_v9 = vadd.f32 %v756_v2, %v746_v46  ;;  %v751_v47 = vadd.f32 %v743_v31, %v580_v3  ;;  %v752_v6 = vadd.f32 %v744_v63, %v581_v37 }
 0x265   :  { %v2037_v5 = vadd.f32 %v756_v2, %v747_v38  ;;  %v2039_v59 = vadd.f32 %v756_v2, %v748_v17  ;;  %v40_v17 = vld [vmem:[%s2130_s2 + $0x10] sm:$0xff] }
 0x266   :  { %v771_v56 = vadd.f32 %v2021_v9, %v2019_v15 }
 0x267   :  { %v868_v49 = vadd.f32 %v2039_v59, %v2037_v5 }
 0x268   :  { %772 = vadd.xlane.f32.xlu1 %v771_v56 }
 0x26d   :  { %v761_v54 = vpop.permute.xlu1 %760 }
 0x26e   :  { %v2025_v30 = vadd.f32 %v761_v54, %v749_v28  ;;  %v2027_v57 = vadd.f32 %v761_v54, %v750_v61  ;;  %v2029_v14 = vadd.f32 %v761_v54, %v751_v47  ;;  %v2031_v55 = vadd.f32 %v761_v54, %v752_v6 }
 0x270   :  { %v774_v23 = vadd.f32 %v2027_v57, %v2025_v30  ;;  %v871_v50 = vadd.f32 %v2031_v55, %v2029_v14 }
 0x272   :  { %775 = vadd.xlane.f32.xlu0 %v774_v23  ;;  %872 = vadd.xlane.f32.xlu1 %v871_v50  ;;  %v31_v50 = vld [vmem:[%s2129_s1 + $0x48] sm:$0xff] }
 0x276   :  { %869 = vadd.xlane.f32.xlu0 %v868_v49  ;;  %v30_v49 = vld [vmem:[%s2129_s1 + $0x40] sm:$0xff] }
 0x2f5   :  { %v773_v22 = vpop.xlane.xlu1 %772 }
 0x2f6   :  { %v777_v32 = vmul.f32 0.00390625, %v773_v22 }
 0x2f8   :  { %v779_v8 = vmul.f32 %v1244_v12, %v777_v32 }
 0x2fa   :  { %v782_v27 = vsel %vm781_vm10, %v779_v8, 0.0 }
 0x2ff   :  { %v873_v16 = vpop.xlane.xlu1 %872  ;;  %v776_v25 = vpop.xlane.xlu0 %775 }
 0x300   :  { %v875_v18 = vmul.f32 0.00390625, %v873_v16  ;;  %v778_v21 = vmul.f32 0.00390625, %v776_v25 }
 0x302   :  { %v780_v36 = vmul.f32 %v1245_v52, %v778_v21  ;;  %v877_v43 = vmul.f32 %v1245_v52, %v875_v18 }
 0x303   :  { %v870_v48 = vpop.xlane.xlu0 %869 }
 0x304   :  { %v783_v51 = vsel %vm781_vm10, %v780_v36, 0.0  ;;  %v874_v58 = vmul.f32 0.00390625, %v870_v48  ;;  %v879_v45 = vsel %vm781_vm10, %v877_v43, 0.0 }
 0x305   :  { %v784_v7 = vadd.f32 %v783_v51, %v782_v27 }
 0x306   :  { %v876_v42 = vmul.f32 %v1244_v12, %v874_v58 }
 0x307   :  { %v785_v20 = vrot.slane %v784_v7, 4 }
 0x308   :  { %v878_v46 = vsel %vm781_vm10, %v876_v42, 0.0 }
 0x309   :  { %v786_v1 = vadd.f32 %v785_v20, %v784_v7  ;;  %v880_v34 = vadd.f32 %v879_v45, %v878_v46 }
 0x30b   :  { %v787_v41 = vrot.slane %v786_v1, 2  ;;  %v881_v33 = vrot.slane %v880_v34, 4 }
 0x30d   :  { %v788_v39 = vadd.f32 %v787_v41, %v786_v1  ;;  %v882_v13 = vadd.f32 %v881_v33, %v880_v34  ;;  %v33_v1 = vld [vmem:[%s2129_s1 + $0x58] sm:$0xff]  ;;  %v32_v34 = vld [vmem:[%s2129_s1 + $0x50] sm:$0xff] }
 0x30f   :  { %v883_v19 = vrot.slane %v882_v13, 2  ;;  %v789_v38 = vrot.slane %v788_v39, 1 }
 0x311   :  { %v884_v3 = vadd.f32 %v883_v19, %v882_v13  ;;  %v790_v37 = vadd.f32 %v789_v38, %v788_v39 }
 0x313   :  { %v885_v40 = vrot.slane %v884_v3, 1  ;;  %v791_v0 = vadd.f32 %v790_v37, %v40_v17  ;;  %v34_v37 = vld [vmem:[%s2129_s1 + $0x60] sm:$0xff] }
 0x315   :  { %v792_v62 = vmax.f32 %v791_v0, 0.0  ;;  %v886_v26 = vadd.f32 %v885_v40, %v884_v3  ;;  %v35_v40 = vld [vmem:[%s2129_s1 + $0x68] sm:$0xff] }
 0x316   :  { %v1226_v0 = vld [vmem:[%s2132_s4 + $0x8] sm:$0xff]  }
 0x317   :  { %v796_v10 = vrot.slane %v792_v62, %v1718_v53  ;;  %v887_v24 = vadd.f32 %v886_v26, %v40_v17  ;;  %v26_v62 = vld [vmem:[%s2129_s1 + $0x20] sm:$0xff]  ;;  %v27_v26 = vld [vmem:[%s2129_s1 + $0x28] sm:$0xff]  ;;  %1150 = vmatmul.mubr.msk.bf16.gmra.mrb[4].mxu0 %vm111_vm1, %v1226_v0  ;;  %1153 = vmatmul.mubr.msk.bf16.gmra.mrb[4].mxu1 %vm111_vm1, %v1226_v0 }
 0x319   :  { %798 = vrot.lane.b32.xlu0 %v796_v10, %s1291_s14  ;;  %v888_v29 = vmax.f32 %v887_v24, 0.0  ;;  %v2184_v10 = vmov 0   ;;  %v36_v24 = vld [vmem:[%s2129_s1 + $0x70] sm:$0xff] }
 0x31a   :  { %1060 = vmatprep.mubr.bf16.mxu0 %v2184_v10  ;;  %1103 = vmatprep.mubr.bf16.mxu1 %v2184_v10 }
 0x31b   :  { %v892_v35 = vrot.slane %v888_v29, %v1718_v53  ;;  %v37_v29 = vld [vmem:[%s2129_s1 + $0x78] sm:$0xff] }
 0x31d   :  { %894 = vrot.lane.b32.xlu1 %v892_v35, %s1291_s14  ;;  %v846_v35 = vsub.s32 4, %v1374_v44 }
 0x38b   :  { %v799_v4 = vpop.permute.xlu0 %798 }
 0x38c   :  { %v801_v60 = vmul.f32 %v1244_v12, %v799_v4  ;;  %v802_v11 = vmul.f32 %v1245_v52, %v799_v4  ;;  %v941_v4 = vsub.s32 5, %v1374_v44 }
 0x38e   :  { %807 = vrot.lane.b32.xlu0 %v802_v11, %s1292_s15  ;;  %805 = vrot.lane.b32.xlu1 %v801_v60, %s1292_s15  ;;  %v1246_v60 = vld [vmem:[%s2131_s3] sm:$0xff] }
 0x38f   :  { %v895_v28 = vpop.permute.xlu1 %894  ;;  %v847_v11 = vrot.slane %v1246_v60, %v846_v35 }
 0x390   :  { %v897_v61 = vmul.f32 %v1244_v12, %v895_v28  ;;  %v898_v2 = vmul.f32 %v1245_v52, %v895_v28  ;;  %v1247_v28 = vld [vmem:[%s2131_s3 + $0x8] sm:$0xff] }
 0x392   :  { %903 = vrot.lane.b32.xlu0 %v898_v2, %s1292_s15  ;;  %901 = vrot.lane.b32.xlu1 %v897_v61, %s1292_s15  ;;  %v851_v61 = vrot.slane %v1247_v28, %v846_v35  ;;  %v1248_v2 = vld [vmem:[%s2131_s3 + $0x10] sm:$0xff] }
 0x400   :  { %v808_v31 = vpop.permute.xlu0 %807  ;;  %v806_v63 = vpop.permute.xlu1 %805 }
 0x401   :  { %v812_v56 = vsel %vm811_vm11, %v806_v63, 0.0  ;;  %v815_v47 = vsel %vm811_vm11, %v808_v31, 0.0  ;;  %v855_v31 = vrot.slane %v1248_v2, %v846_v35  ;;  %v1249_v63 = vld [vmem:[%s2131_s3 + $0x18] sm:$0xff] }
 0x402   :  { %816 = vadd.xlane.f32.xlu0 %v815_v47  ;;  %813 = vadd.xlane.f32.xlu1 %v812_v56  ;;  %v859_v44 = vrot.slane %v1249_v63, %v846_v35 }
 0x404   :  { %v904_v53 = vpop.permute.xlu0 %903  ;;  %v902_v6 = vpop.permute.xlu1 %901 }
 0x405   :  { %v910_v54 = vsel %vm811_vm11, %v904_v53, 0.0  ;;  %v907_v23 = vsel %vm811_vm11, %v902_v6, 0.0  ;;  %v942_v53 = vrot.slane %v1246_v60, %v941_v4  ;;  %v946_v6 = vrot.slane %v1247_v28, %v941_v4 }
 0x406   :  { %911 = vadd.xlane.f32.xlu1 %v910_v54  ;;  %908 = vadd.xlane.f32.xlu0 %v907_v23  ;;  %v950_v54 = vrot.slane %v1248_v2, %v941_v4  ;;  %v954_v23 = vrot.slane %v1249_v63, %v941_v4  ;;  %v1227_v63 = vld [vmem:[%s2132_s4 + $0x10] sm:$0xff]   ;;  %s1250_s4 = scalar_lea.vmem %s1136_s19, 1024 }
 0x407   :  { %p1251_p0 = scmp.ne.s32.totalorder %s1136_s19, %s1250_s4  ;;  %p1256_p2 = scmp.lt.s32.totalorder %s1250_s4, %s1250_s4 }
 0x409   :  { %p1257_p3 = por %p1256_p2, %p1255_p1 }
 0x40b   :  { %p1258_p4 = pnand %p1257_p3, %p1251_p0 }
 0x48f   :  { %v817_v22 = vpop.xlane.xlu0 %816  ;;  %v814_v32 = vpop.xlane.xlu1 %813 }
 0x490   :  { %v819_v16 = vadd.f32 %v817_v22, %v31_v50  ;;  %v818_v25 = vadd.f32 %v814_v32, %v30_v49 }
 0x492   :  { %v1155_v12 = vmul.f32 -1.442695, %v819_v16  ;;  %v1154_v8 = vmul.f32 -1.442695, %v818_v25 }
 0x493   :  { %v909_v18 = vpop.xlane.xlu0 %908  ;;  %v912_v21 = vpop.xlane.xlu1 %911 }
 0x494   :  { %1228 = vpow2.f32 %v1155_v12  ;;  %v913_v52 = vadd.f32 %v909_v18, %v30_v49  ;;  %v914_v36 = vadd.f32 %v912_v21, %v31_v50 }
 0x495   :  { %1230 = vpow2.f32 %v1154_v8 }
 0x496   :  { %v1156_v48 = vmul.f32 -1.442695, %v913_v52  ;;  %v1157_v27 = vmul.f32 -1.442695, %v914_v36 }
 0x498   :  { %1232 = vpow2.f32 %v1156_v48 }
 0x499   :  { %1234 = vpow2.f32 %v1157_v27 }
 0x49e   :  { %v1229_v43 = vpop.eup %1228 }
 0x49f   :  { %v1231_v51 = vpop.eup %1230  ;;  %v827_v58 = vadd.f32 1.0, %v1229_v43 }
 0x4a0   :  { %v826_v7 = vadd.f32 1.0, %v1231_v51 }
 0x4a1   :  { %1236 = vrcp.f32 %v827_v58 }
 0x4a2   :  { %v1233_v42 = vpop.eup %1232  ;;  %1238 = vrcp.f32 %v826_v7 }
 0x4a3   :  { %v1235_v20 = vpop.eup %1234  ;;  %v921_v45 = vadd.f32 1.0, %v1233_v42 }
 0x4a4   :  { %v922_v46 = vadd.f32 1.0, %v1235_v20 }
 0x4a5   :  { %1240 = vrcp.f32 %v921_v45 }
 0x4a6   :  { %1242 = vrcp.f32 %v922_v46 }
 0x4ab   :  { %v1237_v41 = vpop.eup %1236 }
 0x4ac   :  { %v1239_v33 = vpop.eup %1238  ;;  %v833_v39 = vmul.f32 %v1237_v41, %v33_v1 }
 0x4ad   :  { %v832_v13 = vmul.f32 %v1239_v33, %v32_v34 }
 0x4ae   :  { %841 = vperm.xlu1 %1224, %v833_v39  }
 0x4af   :  { %v1241_v19 = vpop.eup %1240  ;;  %836 = vperm.xlu0 %1223, %v832_v13  }
 0x4b0   :  { %v1243_v38 = vpop.eup %1242  ;;  %v927_v17 = vmul.f32 %v1241_v19, %v32_v34 }
 0x4b1   :  { %v928_v3 = vmul.f32 %v1243_v38, %v33_v1 }
 0x4b2   :  { %931 = vperm.xlu1 %1224, %v927_v17  }
 0x4b3   :  { %936 = vperm.xlu0 %1223, %v928_v3  }
 0x4b6   :  { %981 = vperm.xlu1 %1224, %v34_v37  }
 0x4b7   :  { %986 = vperm.xlu0 %1223, %v35_v40  }
 0x4ba   :  { %93 = vperm.xlu1 %1224, %v26_v62  }
 0x4bb   :  { %98 = vperm.xlu0 %1223, %v27_v26  }
 0x4be   :  { %1011 = vperm.xlu1 %1224, %v36_v24  }
 0x4bf   :  { %1016 = vperm.xlu0 %1223, %v37_v29  }
 0x52d   :  { %v842_v56 = vpop.permute.xlu1 %841 }
 0x52e   :  { %v837_v47 = vpop.permute.xlu0 %836  ;;  %v864_v50 = vmul.f32 %v847_v11, %v842_v56  ;;  %v865_v49 = vmul.f32 %v851_v61, %v842_v56  ;;  %v866_v22 = vmul.f32 %v855_v31, %v842_v56  ;;  %v867_v32 = vmul.f32 %v859_v44, %v842_v56 }
 0x52f   :  { %v860_v16 = vmul.f32 %v847_v11, %v837_v47  ;;  %v861_v25 = vmul.f32 %v851_v61, %v837_v47  ;;  %v862_v12 = vmul.f32 %v855_v31, %v837_v47  ;;  %v863_v8 = vmul.f32 %v859_v44, %v837_v47 }
 0x531   :  { %v932_v18 = vpop.permute.xlu1 %931 }
 0x532   :  { %v937_v21 = vpop.permute.xlu0 %936  ;;  %v955_v52 = vmul.f32 %v942_v53, %v932_v18  ;;  %v956_v36 = vmul.f32 %v946_v6, %v932_v18  ;;  %v957_v48 = vmul.f32 %v950_v54, %v932_v18  ;;  %v958_v27 = vmul.f32 %v954_v23, %v932_v18 }
 0x533   :  { %v959_v43 = vmul.f32 %v942_v53, %v937_v21  ;;  %v960_v51 = vmul.f32 %v946_v6, %v937_v21  ;;  %v961_v58 = vmul.f32 %v950_v54, %v937_v21  ;;  %v962_v7 = vmul.f32 %v954_v23, %v937_v21 }
 0x534   :  { %v963_v42 = vadd.f32 %v955_v52, %v860_v16  ;;  %v964_v20 = vadd.f32 %v956_v36, %v861_v25  ;;  %v965_v45 = vadd.f32 %v957_v48, %v862_v12  ;;  %v966_v46 = vadd.f32 %v958_v27, %v863_v8 }
 0x535   :  { %v967_v1 = vadd.f32 %v959_v43, %v864_v50  ;;  %v968_v34 = vadd.f32 %v960_v51, %v865_v49  ;;  %v969_v41 = vadd.f32 %v961_v58, %v866_v22  ;;  %v970_v33 = vadd.f32 %v962_v7, %v867_v32  ;;  %v982_v0 = vpop.permute.xlu1 %981 }
 0x536   :  { %v971_v39 = vmul.f32 %v963_v42, %v2019_v15  ;;  %v972_v13 = vmul.f32 %v964_v20, %v2021_v9  ;;  %v973_v19 = vmul.f32 %v965_v45, %v2037_v5  ;;  %v974_v38 = vmul.f32 %v966_v46, %v2039_v59  ;;  %v987_v62 = vpop.permute.xlu0 %986 }
 0x537   :  { %v975_v17 = vmul.f32 %v967_v1, %v2025_v30  ;;  %v976_v3 = vmul.f32 %v968_v34, %v2027_v57  ;;  %v977_v37 = vmul.f32 %v969_v41, %v2029_v14  ;;  %v978_v40 = vmul.f32 %v970_v33, %v2031_v55 }
 0x538   :  { %v989_v26 = vadd.f32 %v982_v0, %v971_v39  ;;  %v990_v10 = vadd.f32 %v982_v0, %v972_v13  ;;  %v991_v24 = vadd.f32 %v982_v0, %v973_v19  ;;  %v992_v15 = vadd.f32 %v982_v0, %v974_v38 }
 0x539   :  { %v993_v29 = vadd.f32 %v987_v62, %v975_v17  ;;  %v994_v9 = vadd.f32 %v987_v62, %v976_v3  ;;  %v995_v35 = vadd.f32 %v987_v62, %v977_v37  ;;  %v996_v5 = vadd.f32 %v987_v62, %v978_v40  ;;  %v94_v44 = vpop.permute.xlu1 %93 }
 0x53a   :  { %v997_v4 = vmax.f32 %v989_v26, 0.0  ;;  %v999_v59 = vmax.f32 %v991_v24, 0.0  ;;  %v998_v60 = vmax.f32 %v990_v10, 0.0  ;;  %v1000_v30 = vmax.f32 %v992_v15, 0.0  ;;  %v99_v56 = vpop.permute.xlu0 %98 }
 0x53b   :  { %v1001_v11 = vmax.f32 %v993_v29, 0.0  ;;  %v1003_v57 = vmax.f32 %v995_v35, 0.0  ;;  %v1002_v28 = vmax.f32 %v994_v9, 0.0  ;;  %v1004_v14 = vmax.f32 %v996_v5, 0.0 }
 0x53d   :  { %v1006_v61 = vpack.c.bf16 %v1002_v28, %v998_v60  ;;  %v1008_v55 = vpack.c.bf16 %v1004_v14, %v1000_v30  ;;  %v1005_v2 = vpack.c.bf16 %v1001_v11, %v997_v4  ;;  %v1007_v31 = vpack.c.bf16 %v1003_v57, %v999_v59  ;;  %v1012_v47 = vpop.permute.xlu1 %1011 }
 0x53e   :  { %v1017_v53 = vpop.permute.xlu0 %1016  ;;  %v1161_v6 = vadd.f32 %v1012_v47, %v94_v44 }
 0x53f   :  { %1028 = vmatprep.subr.bf16.mxu0 %v1006_v61  ;;  %1071 = vmatprep.subr.bf16.mxu1 %v1008_v55  ;;  %v1165_v50 = vadd.f32 %v1017_v53, %v99_v56 }
 0x540   :  { %1029 = vmatpush1.bf16.msra.mxu0 %v1005_v2  ;;  %1072 = vmatpush1.bf16.msra.mxu1 %v1007_v31 }
 0x543   :  { %1159 = vmatmul.mubr.msk.bf16.vlgmr.msra.gmra.mrb[4].mxu0 %vm1024_vm12, %v1227_v63  ;;  %1160 = vmatmul.mubr.msk.bf16.vlgmr.msra.gmra.mrb[4].mxu1 %vm1024_vm12, %v1227_v63 }
 0x616   :  { %v1062_v54 = vpop.f32.mrb[4].mxu0  ;;  %v1105_v23 = vpop.f32.mrb[4].mxu1 }
 0x617   :  { %v1162_v49 = vadd.f32 %v1161_v6, %v1062_v54  ;;  %v1170_v22 = vadd.f32 %v1161_v6, %v1105_v23  ;;  %v1064_v32 = vpop.f32.mrb[5].mxu0  ;;  %v1107_v16 = vpop.f32.mrb[5].mxu1 }
 0x618   :  { %v1164_v25 = vadd.f32 %v1161_v6, %v1064_v32  ;;  %v1172_v12 = vadd.f32 %v1161_v6, %v1107_v16  ;;  %v1066_v8 = vpop.f32.mrb[6].mxu0  ;;  %v1109_v18 = vpop.f32.mrb[6].mxu1 }
 0x619   :  { %1122 = vst [vmem:[#allocation2] sm:$0xff] %v1162_v49  ;;  %1124 = vst [vmem:[#allocation2 + $0x10] sm:$0xff] %v1170_v22  ;;  %v1166_v21 = vadd.f32 %v1165_v50, %v1066_v8  ;;  %v1174_v52 = vadd.f32 %v1165_v50, %v1109_v18  ;;  %v1068_v36 = vpop.f32.mrb[7].mxu0  ;;  %v1111_v48 = vpop.f32.mrb[7].mxu1 }
 0x61a   :  { %1123 = vst [vmem:[#allocation2 + $0x8] sm:$0xff] %v1164_v25  ;;  %1125 = vst [vmem:[#allocation2 + $0x18] sm:$0xff] %v1172_v12  ;;  %v1168_v27 = vadd.f32 %v1165_v50, %v1068_v36  ;;  %v1176_v43 = vadd.f32 %v1165_v50, %v1111_v48 }
 0x61b   :  { %1126 = vst [vmem:[#allocation2 + $0x20] sm:$0xff] %v1166_v21  ;;  %1128 = vst [vmem:[#allocation2 + $0x30] sm:$0xff] %v1174_v52 }
 0x61c   :  { %1127 = vst [vmem:[#allocation2 + $0x28] sm:$0xff] %v1168_v27  ;;  %1129 = vst [vmem:[#allocation2 + $0x38] sm:$0xff] %v1176_v43 }
 0x61d   :  { %1261 = shalt.err (!%p1258_p4)
}
 0x61e   :  { %s1262_s22 = scalar_lea.hbm %s2133_s5, 1024 }
 0x61f   :  { %p1263_p5 = scmp.ne.s32.totalorder %s2133_s5, %s1262_s22  ;;  %p1266_p6 = scmp.lt.u32.totalorder %s1262_s22, %s2133_s5 }
 0x621   :  { %p1268_p7 = pnand %p1266_p6, %p1263_p5 }
 0x623   :  { %1271 = shalt.err (!%p1268_p7)
}
 0x624   :  { %s1294_s27 = smov 512   ;;  %s1295_s28 = smov 32  }
 0x625   :  { %1141 = dma.vmem_to_hbm [thread:$0]  %s1136_s19, 1024, %s2133_s5, [#allocation3], %s1294_s27, %s1294_s27, %s1295_s28  }
 0x626   :  { %1272 = dma.done.wait [#allocation3], 1024  }
 0x627   :  { %1273 = vsyncadd [#allocation3], 4294966272 }
 0x628   :  { %1145 = vsyncpa [#allocation3], 1 }

</bundles_post_ra>
